<compile_context>
chip_gen: v7x
topology: tpu7x:2x2x1
jax: 0.10.0
libtpu: 0.0.40
codegen_flags: <defaults>
</compile_context>

<pallas_src>
import functools

import jax
import jax.numpy as jnp
from jax.experimental import pallas as pl
from jax.experimental.pallas import tpu as pltpu


def _make_divisible(ch, divisor=8, min_ch=None):
    if min_ch is None:
        min_ch = divisor
    new_ch = max(min_ch, int(ch + divisor / 2) // divisor * divisor)
    if new_ch < 0.9 * ch:
        new_ch += divisor
    return new_ch


def _inverted_residual_kernel(
    x_ref, w_exp_ref, s_exp_ref, b_exp_ref, a1_ref,
    w_dw_ref, s_dw_ref, b_dw_ref, a2_ref,
    w_fc1_ref, b_fc1_ref, w_fc2_ref, b_fc2_ref,
    w_proj_ref, s_proj_ref, b_proj_ref,
    out_ref,
    *, ksize, ce, use_res_connect,
):
    K = ksize
    pd = (K - 1) // 2
    H, _ = out_ref.shape            # (spatial rows, W*Cout)  -- lane-dense output
    F = w_dw_ref.shape[1]           # W*Ce : fused lane width of the expanded features

    x = x_ref[...]                  # (Hp, W*Cin): H rows + pd zero rows + alignment rows

    # --- 1) expand 1x1 conv: one lane-dense MXU matmul against a block-diagonal
    #        weight whose extra zero columns emit the depthwise conv's W padding.
    e = jnp.dot(x, w_exp_ref[...], preferred_element_type=jnp.float32)  # (Hp, (W+2pd)*Ce)
    e = e * s_exp_ref[...] + b_exp_ref[...]      # folded BN (pad columns: scale=bias=0)
    a1 = a1_ref[0]
    e = jnp.where(e >= 0.0, e, a1 * e)           # PReLU
    # zero the H-padding / alignment rows (the BN bias made them non-zero)
    row = jax.lax.broadcasted_iota(jnp.int32, e.shape, 0)
    e = jnp.where((row >= pd) & (row < pd + H), e, 0.0)

    # --- 2) depthwise KxK conv (stride 1): K*K in-register shifted taps
    #        (static sublane/lane slices of the padded activation); no VMEM scratch.
    # TODO(synk): stride>1 depthwise not implemented; this instance uses stride=1.
    w_dw = w_dw_ref[...]                         # (K*K, W*Ce), per-tap, tiled along W
    acc = jnp.zeros((H, F), jnp.float32)
    for ki in range(K):
        for kj in range(K):
            t = ki * K + kj
            tap = e[ki:ki + H, kj * ce:kj * ce + F]
            acc = acc + tap * w_dw[t:t + 1]
    d = acc * s_dw_ref[...] + b_dw_ref[...]      # folded BN
    a2 = a2_ref[0]
    d = jnp.where(d >= 0.0, d, a2 * d)           # PReLU

    # --- 3) Squeeze-Excitation.  Global average pool folded into fc1's weight
    #        (tiled over W, scaled 1/(H*W)); broadcast back over W folded into fc2.
    ssum = jnp.sum(d, axis=0, keepdims=True)     # (1, W*Ce)
    h1 = jnp.dot(ssum, w_fc1_ref[...], preferred_element_type=jnp.float32) + b_fc1_ref[...]
    h1 = jnp.maximum(h1, 0.0)                    # ReLU
    h2 = jnp.dot(h1, w_fc2_ref[...], preferred_element_type=jnp.float32) + b_fc2_ref[...]
    hs = jnp.clip(h2 * (1.0 / 6.0) + 0.5, 0.0, 1.0)   # hardsigmoid
    d = d * hs                                   # broadcast over rows

    # --- 4) project 1x1 conv (block-diagonal matmul) + folded BN, then residual.
    o = jnp.dot(d, w_proj_ref[...], preferred_element_type=jnp.float32)  # (H, W*Cout)
    o = o * s_proj_ref[...] + b_proj_ref[...]
    if use_res_connect:
        o = o + x[pd:pd + H, :]
    out_ref[...] = o.astype(out_ref.dtype)       # dense 128-lane store


def inverted_residual(x_nchw, params, *, ksize, use_res_connect):
    """x_nchw: (B, Cin, H, W) float32 (PyTorch layout). Returns (B, Cout, H, W)."""
    B, Cin, H, W = x_nchw.shape
    Ce = params["w_exp"].shape[1]
    Cout = params["w_proj"].shape[1]
    Cs = params["w_fc1"].shape[1]
    K = ksize
    pd = (K - 1) // 2
    Fin, F, Fout = W * Cin, W * Ce, W * Cout
    # padded row count, rounded up to a multiple of 8 to keep sublane tiles aligned
    Hp = ((H + 2 * pd + 7) // 8) * 8

    f32 = jnp.float32

    # lane-dense fused activation layout: NCHW -> NHWC -> (B, H, W*Cin)
    x_f = jnp.transpose(x_nchw, (0, 2, 3, 1)).reshape(B, H, Fin)
    x_pad = jnp.pad(x_f, ((0, 0), (pd, Hp - H - pd), (0, 0)))

    eye_w = jnp.eye(W, dtype=f32)

    def tile_w(v):                                   # (C,) -> (1, W*C) fused layout
        return jnp.tile(jnp.asarray(v, f32).reshape(1, -1), (1, W))

    def pad_cols(a):                                 # add pd*Ce zero columns each side
        return jnp.pad(a, ((0, 0), (pd * Ce, pd * Ce)))

    # expand 1x1 as block-diagonal (W*Cin, (W+2pd)*Ce); zero columns = W padding
    w_exp_big = pad_cols(jnp.kron(eye_w, params["w_exp"].astype(f32)))
    s_exp_pad = pad_cols(tile_w(params["s_exp"]))    # zero scale/bias on pad columns
    b_exp_pad = pad_cols(tile_w(params["b_exp"]))

    # depthwise weights: one row per tap, tiled along W -> (K*K, W*Ce)
    w_dw_t = jnp.tile(params["w_dw"].astype(f32).reshape(K * K, Ce), (1, W))
    s_dw_t, b_dw_t = tile_w(params["s_dw"]), tile_w(params["b_dw"])

    # SE: fold the global average pool into fc1, the W-broadcast into fc2
    w_fc1_big = jnp.tile(params["w_fc1"].astype(f32), (W, 1)) / float(H * W)  # (W*Ce, Cs)
    b_fc1 = params["b_fc1"].astype(f32).reshape(1, Cs)
    w_fc2_big = jnp.tile(params["w_fc2"].astype(f32), (1, W))                  # (Cs, W*Ce)
    b_fc2_t = tile_w(params["b_fc2"])

    # project 1x1 as block-diagonal (W*Ce, W*Cout)
    w_proj_big = jnp.kron(eye_w, params["w_proj"].astype(f32))
    s_proj_t, b_proj_t = tile_w(params["s_proj"]), tile_w(params["b_proj"])

    alpha1 = params["alpha1"].astype(f32).reshape(1)
    alpha2 = params["alpha2"].astype(f32).reshape(1)

    # TODO(synk): on v6e/v7x the matmul operands could be cast to bf16 (f32 accumulate)
    # to halve DMA bytes; kept f32 here to match the f32 reference exactly.

    def wspec(arr):                                  # whole, grid-invariant VMEM operand
        nd = arr.ndim
        return pl.BlockSpec(arr.shape, lambda b: (0,) * nd)

    smem = pl.BlockSpec(memory_space=pltpu.MemorySpace.SMEM)

    weights = (w_exp_big, s_exp_pad, b_exp_pad, alpha1,
               w_dw_t, s_dw_t, b_dw_t, alpha2,
               w_fc1_big, b_fc1, w_fc2_big, b_fc2_t,
               w_proj_big, s_proj_t, b_proj_t)
    in_specs = [pl.BlockSpec((None, Hp, Fin), lambda b: (b, 0, 0))]
    in_specs += [smem if w.ndim == 1 else wspec(w) for w in weights]

    kern = functools.partial(_inverted_residual_kernel, ksize=K, ce=Ce,
                             use_res_connect=use_res_connect)

    out_f = pl.pallas_call(
        kern,
        out_shape=jax.ShapeDtypeStruct((B, H, Fout), f32),
        grid=(B,),                                   # one image per grid step / core
        in_specs=in_specs,
        out_specs=pl.BlockSpec((None, H, Fout), lambda b: (b, 0, 0)),
        compiler_params=pltpu.CompilerParams(
            dimension_semantics=("parallel",),       # shards over the 2 TCs on v7x
            vmem_limit_bytes=32 * 1024 * 1024,
        ),
    )(x_pad, *weights)

    # (B, H, W*Cout) -> NHWC -> NCHW
    return jnp.transpose(out_f.reshape(B, H, W, Cout), (0, 3, 1, 2))


def ref_forward(x, p, *, use_res_connect):
    """Pure-JAX reference (NCHW) used to validate the Pallas kernel."""
    Ce = p["w_exp"].shape[1]
    e = jnp.einsum("bchw,cd->bdhw", x, p["w_exp"])
    e = e * p["s_exp"][None, :, None, None] + p["b_exp"][None, :, None, None]
    e = jnp.where(e >= 0, e, p["alpha1"] * e)
    w_dw = jnp.transpose(p["w_dw"], (2, 0, 1))[:, None, :, :]  # (Ce, 1, K, K)
    d = jax.lax.conv_general_dilated(
        e, w_dw, window_strides=(1, 1), padding="SAME",
        feature_group_count=Ce,
        dimension_numbers=("NCHW", "OIHW", "NCHW"))
    d = d * p["s_dw"][None, :, None, None] + p["b_dw"][None, :, None, None]
    d = jnp.where(d >= 0, d, p["alpha2"] * d)
    pooled = d.mean(axis=(2, 3))
    h1 = jnp.maximum(pooled @ p["w_fc1"] + p["b_fc1"], 0.0)
    h2 = h1 @ p["w_fc2"] + p["b_fc2"]
    hs = jnp.clip(h2 / 6.0 + 0.5, 0.0, 1.0)
    d = d * hs[:, :, None, None]
    o = jnp.einsum("bchw,cd->bdhw", d, p["w_proj"])
    o = o * p["s_proj"][None, :, None, None] + p["b_proj"][None, :, None, None]
    return x + o if use_res_connect else o


if __name__ == "__main__":
    B, Cin, H, W = 2, 8, 16, 16
    expanded_c, out_c, ksize, stride, use_se = 32, 8, 3, 1, True
    squeeze_c = _make_divisible(expanded_c // 4, 8)
    use_res_connect = (stride == 1 and Cin == out_c)

    key = jax.random.PRNGKey(0)
    ks = jax.random.split(key, 12)

    def bn_fold(k, C, eps=1e-5):
        kg, kb, km, kv = jax.random.split(k, 4)
        gamma = jax.random.uniform(kg, (C,), minval=0.5, maxval=1.5)
        beta = 0.1 * jax.random.normal(kb, (C,))
        mean = 0.1 * jax.random.normal(km, (C,))
        var = jax.random.uniform(kv, (C,), minval=0.5, maxval=1.5)
        scale = gamma / jnp.sqrt(var + eps)
        return scale, beta - mean * scale

    s_exp, b_exp = bn_fold(ks[0], expanded_c)
    s_dw, b_dw = bn_fold(ks[1], expanded_c)
    s_proj, b_proj = bn_fold(ks[2], out_c)

    params = dict(
        w_exp=0.2 * jax.random.normal(ks[3], (Cin, expanded_c)),
        s_exp=s_exp, b_exp=b_exp, alpha1=jnp.array(0.25),
        w_dw=0.2 * jax.random.normal(ks[4], (ksize, ksize, expanded_c)),
        s_dw=s_dw, b_dw=b_dw, alpha2=jnp.array(0.25),
        w_fc1=0.2 * jax.random.normal(ks[5], (expanded_c, squeeze_c)),
        b_fc1=0.1 * jax.random.normal(ks[6], (squeeze_c,)),
        w_fc2=0.2 * jax.random.normal(ks[7], (squeeze_c, expanded_c)),
        b_fc2=0.1 * jax.random.normal(ks[8], (expanded_c,)),
        w_proj=0.2 * jax.random.normal(ks[9], (expanded_c, out_c)),
        s_proj=s_proj, b_proj=b_proj,
    )
    params = jax.tree.map(lambda a: jnp.asarray(a, jnp.float32), params)

    x = jax.random.normal(ks[10], (B, Cin, H, W), jnp.float32)  # NCHW, like PyTorch

    out = inverted_residual(x, params, ksize=ksize, use_res_connect=use_res_connect)
    out = jax.block_until_ready(out)

    ref = ref_forward(x, params, use_res_connect=use_res_connect)
    assert out.shape == (B, out_c, H, W)
    assert jnp.allclose(out, ref, atol=1e-4, rtol=1e-4), float(jnp.max(jnp.abs(out - ref)))
    print("KERNEL_OK")
</pallas_src>

<mosaic_0001>
module attributes {stable_mosaic.version = 11 : i64} {
  func.func @_inverted_residual_kernel(%arg0: i32, %arg1: memref<1x24x128xf32, #tpu.memory_space<vmem>>, %arg2: memref<128x576xf32, #tpu.memory_space<vmem>>, %arg3: memref<1x576xf32, #tpu.memory_space<vmem>>, %arg4: memref<1x576xf32, #tpu.memory_space<vmem>>, %arg5: memref<1xf32, #tpu.memory_space<smem>>, %arg6: memref<9x512xf32, #tpu.memory_space<vmem>>, %arg7: memref<1x512xf32, #tpu.memory_space<vmem>>, %arg8: memref<1x512xf32, #tpu.memory_space<vmem>>, %arg9: memref<1xf32, #tpu.memory_space<smem>>, %arg10: memref<512x8xf32, #tpu.memory_space<vmem>>, %arg11: memref<1x8xf32, #tpu.memory_space<vmem>>, %arg12: memref<8x512xf32, #tpu.memory_space<vmem>>, %arg13: memref<1x512xf32, #tpu.memory_space<vmem>>, %arg14: memref<512x128xf32, #tpu.memory_space<vmem>>, %arg15: memref<1x128xf32, #tpu.memory_space<vmem>>, %arg16: memref<1x128xf32, #tpu.memory_space<vmem>>, %arg17: memref<1x16x128xf32, #tpu.memory_space<vmem>>) attributes {dimension_semantics = [#tpu.dimension_semantics<parallel>], iteration_bounds = array<i64: 2>, scalar_prefetch = 0 : i64, scratch_operands = 0 : i64, tpu.core_type = #tpu.core_type<tc>, window_params = [{transform_indices = @transform_0, window_bounds = array<i64: 1, 24, 128>}, {pipeline_mode = #tpu.pipeline_mode<synchronous>, transform_indices = @transform_1, window_bounds = array<i64: 128, 576>}, {pipeline_mode = #tpu.pipeline_mode<synchronous>, transform_indices = @transform_2, window_bounds = array<i64: 1, 576>}, {pipeline_mode = #tpu.pipeline_mode<synchronous>, transform_indices = @transform_3, window_bounds = array<i64: 1, 576>}, {transform_indices = @transform_4, window_bounds = array<i64: 1>}, {pipeline_mode = #tpu.pipeline_mode<synchronous>, transform_indices = @transform_5, window_bounds = array<i64: 9, 512>}, {pipeline_mode = #tpu.pipeline_mode<synchronous>, transform_indices = @transform_6, window_bounds = array<i64: 1, 512>}, {pipeline_mode = #tpu.pipeline_mode<synchronous>, transform_indices = @transform_7, window_bounds = array<i64: 1, 512>}, {transform_indices = @transform_8, window_bounds = array<i64: 1>}, {pipeline_mode = #tpu.pipeline_mode<synchronous>, transform_indices = @transform_9, window_bounds = array<i64: 512, 8>}, {pipeline_mode = #tpu.pipeline_mode<synchronous>, transform_indices = @transform_10, window_bounds = array<i64: 1, 8>}, {pipeline_mode = #tpu.pipeline_mode<synchronous>, transform_indices = @transform_11, window_bounds = array<i64: 8, 512>}, {pipeline_mode = #tpu.pipeline_mode<synchronous>, transform_indices = @transform_12, window_bounds = array<i64: 1, 512>}, {pipeline_mode = #tpu.pipeline_mode<synchronous>, transform_indices = @transform_13, window_bounds = array<i64: 512, 128>}, {pipeline_mode = #tpu.pipeline_mode<synchronous>, transform_indices = @transform_14, window_bounds = array<i64: 1, 128>}, {pipeline_mode = #tpu.pipeline_mode<synchronous>, transform_indices = @transform_15, window_bounds = array<i64: 1, 128>}, {transform_indices = @transform_16, window_bounds = array<i64: 1, 16, 128>}]} {
    %c0 = arith.constant 0 : index
    %c0_0 = arith.constant 0 : index
    %c0_1 = arith.constant 0 : index
    %0 = vector.load %arg1[%c0, %c0_0, %c0_1] : memref<1x24x128xf32, #tpu.memory_space<vmem>>, vector<1x24x128xf32>
    %1 = vector.shape_cast %0 : vector<1x24x128xf32> to vector<24x128xf32>
    %c0_2 = arith.constant 0 : index
    %c0_3 = arith.constant 0 : index
    %2 = vector.load %arg2[%c0_2, %c0_3] : memref<128x576xf32, #tpu.memory_space<vmem>>, vector<128x576xf32>
    %cst = arith.constant dense<0.000000e+00> : vector<24x576xf32>
    %3 = tpu.matmul %1, %2, %cst {dimension_numbers = #tpu.dot_dimension_numbers<[1], [0], [0], [1], [0, 0, 1, 1], [], []>} : vector<24x128xf32>, vector<128x576xf32>, vector<24x576xf32> -> vector<24x576xf32>
    %c0_4 = arith.constant 0 : index
    %c0_5 = arith.constant 0 : index
    %4 = vector.load %arg3[%c0_4, %c0_5] : memref<1x576xf32, #tpu.memory_space<vmem>>, vector<1x576xf32>
    %5 = vector.broadcast %4 : vector<1x576xf32> to vector<24x576xf32>
    %6 = arith.mulf %3, %5 : vector<24x576xf32>
    %c0_6 = arith.constant 0 : index
    %c0_7 = arith.constant 0 : index
    %7 = vector.load %arg4[%c0_6, %c0_7] : memref<1x576xf32, #tpu.memory_space<vmem>>, vector<1x576xf32>
    %8 = vector.broadcast %7 : vector<1x576xf32> to vector<24x576xf32>
    %9 = arith.addf %6, %8 : vector<24x576xf32>
    %c0_8 = arith.constant 0 : index
    %10 = memref.load %arg5[%c0_8] : memref<1xf32, #tpu.memory_space<smem>>
    %cst_9 = arith.constant 0.000000e+00 : f32
    %11 = vector.broadcast %cst_9 : f32 to vector<24x576xf32>
    %12 = arith.cmpf oge, %9, %11 : vector<24x576xf32>
    %13 = vector.broadcast %10 : f32 to vector<24x576xf32>
    %14 = arith.mulf %13, %9 : vector<24x576xf32>
    %15 = arith.select %12, %9, %14 : vector<24x576xi1>, vector<24x576xf32>
    %16 = tpu.iota {dimensions = array<i32: 0>} : vector<24x576xi32>
    %c1_i32 = arith.constant 1 : i32
    %17 = vector.broadcast %c1_i32 : i32 to vector<24x576xi32>
    %18 = arith.cmpi sge, %16, %17 : vector<24x576xi32>
    %c17_i32 = arith.constant 17 : i32
    %19 = vector.broadcast %c17_i32 : i32 to vector<24x576xi32>
    %20 = arith.cmpi slt, %16, %19 : vector<24x576xi32>
    %21 = arith.andi %18, %20 : vector<24x576xi1>
    %cst_10 = arith.constant 0.000000e+00 : f32
    %22 = vector.broadcast %cst_10 : f32 to vector<24x576xf32>
    %23 = arith.select %21, %15, %22 : vector<24x576xi1>, vector<24x576xf32>
    %c0_11 = arith.constant 0 : index
    %c0_12 = arith.constant 0 : index
    %24 = vector.load %arg6[%c0_11, %c0_12] : memref<9x512xf32, #tpu.memory_space<vmem>>, vector<9x512xf32>
    %cst_13 = arith.constant 0.000000e+00 : f32
    %25 = vector.broadcast %cst_13 : f32 to vector<16x512xf32>
    %26 = vector.extract_strided_slice %23 {offsets = [0, 0], sizes = [16, 512], strides = [1, 1]} : vector<24x576xf32> to vector<16x512xf32>
    %27 = vector.extract_strided_slice %24 {offsets = [0, 0], sizes = [1, 512], strides = [1, 1]} : vector<9x512xf32> to vector<1x512xf32>
    %28 = vector.broadcast %27 : vector<1x512xf32> to vector<16x512xf32>
    %29 = arith.mulf %26, %28 : vector<16x512xf32>
    %30 = arith.addf %25, %29 : vector<16x512xf32>
    %31 = vector.extract_strided_slice %23 {offsets = [0, 32], sizes = [16, 512], strides = [1, 1]} : vector<24x576xf32> to vector<16x512xf32>
    %32 = vector.extract_strided_slice %24 {offsets = [1, 0], sizes = [1, 512], strides = [1, 1]} : vector<9x512xf32> to vector<1x512xf32>
    %33 = vector.broadcast %32 : vector<1x512xf32> to vector<16x512xf32>
    %34 = arith.mulf %31, %33 : vector<16x512xf32>
    %35 = arith.addf %30, %34 : vector<16x512xf32>
    %36 = vector.extract_strided_slice %23 {offsets = [0, 64], sizes = [16, 512], strides = [1, 1]} : vector<24x576xf32> to vector<16x512xf32>
    %37 = vector.extract_strided_slice %24 {offsets = [2, 0], sizes = [1, 512], strides = [1, 1]} : vector<9x512xf32> to vector<1x512xf32>
    %38 = vector.broadcast %37 : vector<1x512xf32> to vector<16x512xf32>
    %39 = arith.mulf %36, %38 : vector<16x512xf32>
    %40 = arith.addf %35, %39 : vector<16x512xf32>
    %41 = vector.extract_strided_slice %23 {offsets = [1, 0], sizes = [16, 512], strides = [1, 1]} : vector<24x576xf32> to vector<16x512xf32>
    %42 = vector.extract_strided_slice %24 {offsets = [3, 0], sizes = [1, 512], strides = [1, 1]} : vector<9x512xf32> to vector<1x512xf32>
    %43 = vector.broadcast %42 : vector<1x512xf32> to vector<16x512xf32>
    %44 = arith.mulf %41, %43 : vector<16x512xf32>
    %45 = arith.addf %40, %44 : vector<16x512xf32>
    %46 = vector.extract_strided_slice %23 {offsets = [1, 32], sizes = [16, 512], strides = [1, 1]} : vector<24x576xf32> to vector<16x512xf32>
    %47 = vector.extract_strided_slice %24 {offsets = [4, 0], sizes = [1, 512], strides = [1, 1]} : vector<9x512xf32> to vector<1x512xf32>
    %48 = vector.broadcast %47 : vector<1x512xf32> to vector<16x512xf32>
    %49 = arith.mulf %46, %48 : vector<16x512xf32>
    %50 = arith.addf %45, %49 : vector<16x512xf32>
    %51 = vector.extract_strided_slice %23 {offsets = [1, 64], sizes = [16, 512], strides = [1, 1]} : vector<24x576xf32> to vector<16x512xf32>
    %52 = vector.extract_strided_slice %24 {offsets = [5, 0], sizes = [1, 512], strides = [1, 1]} : vector<9x512xf32> to vector<1x512xf32>
    %53 = vector.broadcast %52 : vector<1x512xf32> to vector<16x512xf32>
    %54 = arith.mulf %51, %53 : vector<16x512xf32>
    %55 = arith.addf %50, %54 : vector<16x512xf32>
    %56 = vector.extract_strided_slice %23 {offsets = [2, 0], sizes = [16, 512], strides = [1, 1]} : vector<24x576xf32> to vector<16x512xf32>
    %57 = vector.extract_strided_slice %24 {offsets = [6, 0], sizes = [1, 512], strides = [1, 1]} : vector<9x512xf32> to vector<1x512xf32>
    %58 = vector.broadcast %57 : vector<1x512xf32> to vector<16x512xf32>
    %59 = arith.mulf %56, %58 : vector<16x512xf32>
    %60 = arith.addf %55, %59 : vector<16x512xf32>
    %61 = vector.extract_strided_slice %23 {offsets = [2, 32], sizes = [16, 512], strides = [1, 1]} : vector<24x576xf32> to vector<16x512xf32>
    %62 = vector.extract_strided_slice %24 {offsets = [7, 0], sizes = [1, 512], strides = [1, 1]} : vector<9x512xf32> to vector<1x512xf32>
    %63 = vector.broadcast %62 : vector<1x512xf32> to vector<16x512xf32>
    %64 = arith.mulf %61, %63 : vector<16x512xf32>
    %65 = arith.addf %60, %64 : vector<16x512xf32>
    %66 = vector.extract_strided_slice %23 {offsets = [2, 64], sizes = [16, 512], strides = [1, 1]} : vector<24x576xf32> to vector<16x512xf32>
    %67 = vector.extract_strided_slice %24 {offsets = [8, 0], sizes = [1, 512], strides = [1, 1]} : vector<9x512xf32> to vector<1x512xf32>
    %68 = vector.broadcast %67 : vector<1x512xf32> to vector<16x512xf32>
    %69 = arith.mulf %66, %68 : vector<16x512xf32>
    %70 = arith.addf %65, %69 : vector<16x512xf32>
    %c0_14 = arith.constant 0 : index
    %c0_15 = arith.constant 0 : index
    %71 = vector.load %arg7[%c0_14, %c0_15] : memref<1x512xf32, #tpu.memory_space<vmem>>, vector<1x512xf32>
    %72 = vector.broadcast %71 : vector<1x512xf32> to vector<16x512xf32>
    %73 = arith.mulf %70, %72 : vector<16x512xf32>
    %c0_16 = arith.constant 0 : index
    %c0_17 = arith.constant 0 : index
    %74 = vector.load %arg8[%c0_16, %c0_17] : memref<1x512xf32, #tpu.memory_space<vmem>>, vector<1x512xf32>
    %75 = vector.broadcast %74 : vector<1x512xf32> to vector<16x512xf32>
    %76 = arith.addf %73, %75 : vector<16x512xf32>
    %c0_18 = arith.constant 0 : index
    %77 = memref.load %arg9[%c0_18] : memref<1xf32, #tpu.memory_space<smem>>
    %cst_19 = arith.constant 0.000000e+00 : f32
    %78 = vector.broadcast %cst_19 : f32 to vector<16x512xf32>
    %79 = arith.cmpf oge, %76, %78 : vector<16x512xf32>
    %80 = vector.broadcast %77 : f32 to vector<16x512xf32>
    %81 = arith.mulf %80, %76 : vector<16x512xf32>
    %82 = arith.select %79, %76, %81 : vector<16x512xi1>, vector<16x512xf32>
    %cst_20 = arith.constant dense<0.000000e+00> : vector<512xf32>
    %83 = vector.multi_reduction <add>, %82, %cst_20 [0] : vector<16x512xf32> to vector<512xf32>
    %84 = vector.shape_cast %83 : vector<512xf32> to vector<1x512xf32>
    %c0_21 = arith.constant 0 : index
    %c0_22 = arith.constant 0 : index
    %85 = vector.load %arg10[%c0_21, %c0_22] : memref<512x8xf32, #tpu.memory_space<vmem>>, vector<512x8xf32>
    %cst_23 = arith.constant dense<0.000000e+00> : vector<1x8xf32>
    %86 = tpu.matmul %84, %85, %cst_23 {dimension_numbers = #tpu.dot_dimension_numbers<[1], [0], [0], [1], [0, 0, 1, 1], [], []>} : vector<1x512xf32>, vector<512x8xf32>, vector<1x8xf32> -> vector<1x8xf32>
    %c0_24 = arith.constant 0 : index
    %c0_25 = arith.constant 0 : index
    %87 = vector.load %arg11[%c0_24, %c0_25] : memref<1x8xf32, #tpu.memory_space<vmem>>, vector<1x8xf32>
    %88 = arith.addf %86, %87 : vector<1x8xf32>
    %cst_26 = arith.constant 0.000000e+00 : f32
    %89 = vector.broadcast %cst_26 : f32 to vector<1x8xf32>
    %90 = arith.maximumf %88, %89 : vector<1x8xf32>
    %c0_27 = arith.constant 0 : index
    %c0_28 = arith.constant 0 : index
    %91 = vector.load %arg12[%c0_27, %c0_28] : memref<8x512xf32, #tpu.memory_space<vmem>>, vector<8x512xf32>
    %cst_29 = arith.constant dense<0.000000e+00> : vector<1x512xf32>
    %92 = tpu.matmul %90, %91, %cst_29 {dimension_numbers = #tpu.dot_dimension_numbers<[1], [0], [0], [1], [0, 0, 1, 1], [], []>} : vector<1x8xf32>, vector<8x512xf32>, vector<1x512xf32> -> vector<1x512xf32>
    %c0_30 = arith.constant 0 : index
    %c0_31 = arith.constant 0 : index
    %93 = vector.load %arg13[%c0_30, %c0_31] : memref<1x512xf32, #tpu.memory_space<vmem>>, vector<1x512xf32>
    %94 = arith.addf %92, %93 : vector<1x512xf32>
    %cst_32 = arith.constant 0.166666672 : f32
    %95 = vector.broadcast %cst_32 : f32 to vector<1x512xf32>
    %96 = arith.mulf %94, %95 : vector<1x512xf32>
    %cst_33 = arith.constant 5.000000e-01 : f32
    %97 = vector.broadcast %cst_33 : f32 to vector<1x512xf32>
    %98 = arith.addf %96, %97 : vector<1x512xf32>
    %cst_34 = arith.constant 0.000000e+00 : f32
    %cst_35 = arith.constant 1.000000e+00 : f32
    %99 = vector.broadcast %cst_34 : f32 to vector<1x512xf32>
    %100 = arith.maximumf %99, %98 : vector<1x512xf32>
    %101 = vector.broadcast %cst_35 : f32 to vector<1x512xf32>
    %102 = arith.minimumf %101, %100 : vector<1x512xf32>
    %103 = vector.broadcast %102 : vector<1x512xf32> to vector<16x512xf32>
    %104 = arith.mulf %82, %103 : vector<16x512xf32>
    %c0_36 = arith.constant 0 : index
    %c0_37 = arith.constant 0 : index
    %105 = vector.load %arg14[%c0_36, %c0_37] : memref<512x128xf32, #tpu.memory_space<vmem>>, vector<512x128xf32>
    %cst_38 = arith.constant dense<0.000000e+00> : vector<16x128xf32>
    %106 = tpu.matmul %104, %105, %cst_38 {dimension_numbers = #tpu.dot_dimension_numbers<[1], [0], [0], [1], [0, 0, 1, 1], [], []>} : vector<16x512xf32>, vector<512x128xf32>, vector<16x128xf32> -> vector<16x128xf32>
    %c0_39 = arith.constant 0 : index
    %c0_40 = arith.constant 0 : index
    %107 = vector.load %arg15[%c0_39, %c0_40] : memref<1x128xf32, #tpu.memory_space<vmem>>, vector<1x128xf32>
    %108 = vector.broadcast %107 : vector<1x128xf32> to vector<16x128xf32>
    %109 = arith.mulf %106, %108 : vector<16x128xf32>
    %c0_41 = arith.constant 0 : index
    %c0_42 = arith.constant 0 : index
    %110 = vector.load %arg16[%c0_41, %c0_42] : memref<1x128xf32, #tpu.memory_space<vmem>>, vector<1x128xf32>
    %111 = vector.broadcast %110 : vector<1x128xf32> to vector<16x128xf32>
    %112 = arith.addf %109, %111 : vector<16x128xf32>
    %113 = vector.extract_strided_slice %1 {offsets = [1, 0], sizes = [16, 128], strides = [1, 1]} : vector<24x128xf32> to vector<16x128xf32>
    %114 = arith.addf %112, %113 : vector<16x128xf32>
    %c0_43 = arith.constant 0 : index
    %c0_44 = arith.constant 0 : index
    %c0_45 = arith.constant 0 : index
    %115 = vector.load %arg17[%c0_43, %c0_44, %c0_45] : memref<1x16x128xf32, #tpu.memory_space<vmem>>, vector<1x16x128xf32>
    %116 = vector.shape_cast %115 : vector<1x16x128xf32> to vector<16x128xf32>
    %117 = vector.shape_cast %114 : vector<16x128xf32> to vector<1x16x128xf32>
    tpu.vector_store %arg17[%c0_43, %c0_44, %c0_45], %117 {strides = array<i32>} : memref<1x16x128xf32, #tpu.memory_space<vmem>>, vector<1x16x128xf32>,
    return
  }
  func.func @transform_0(%arg0: i32) -> (i32, i32, i32) {
    %c0_i32 = arith.constant 0 : i32
    %c0_i32_0 = arith.constant 0 : i32
    %c0_i32_1 = arith.constant 0 : i32
    return %arg0, %c0_i32, %c0_i32_0 : i32, i32, i32
  }
  func.func @transform_1(%arg0: i32) -> (i32, i32) {
    %c0_i32 = arith.constant 0 : i32
    %c0_i32_0 = arith.constant 0 : i32
    %c0_i32_1 = arith.constant 0 : i32
    return %c0_i32, %c0_i32_0 : i32, i32
  }
  func.func @transform_2(%arg0: i32) -> (i32, i32) {
    %c0_i32 = arith.constant 0 : i32
    %c0_i32_0 = arith.constant 0 : i32
    %c0_i32_1 = arith.constant 0 : i32
    return %c0_i32, %c0_i32_0 : i32, i32
  }
  func.func @transform_3(%arg0: i32) -> (i32, i32) {
    %c0_i32 = arith.constant 0 : i32
    %c0_i32_0 = arith.constant 0 : i32
    %c0_i32_1 = arith.constant 0 : i32
    return %c0_i32, %c0_i32_0 : i32, i32
  }
  func.func @transform_4(%arg0: i32) -> i32 {
    %c0_i32 = arith.constant 0 : i32
    %c0_i32_0 = arith.constant 0 : i32
    return %c0_i32 : i32
  }
  func.func @transform_5(%arg0: i32) -> (i32, i32) {
    %c0_i32 = arith.constant 0 : i32
    %c0_i32_0 = arith.constant 0 : i32
    %c0_i32_1 = arith.constant 0 : i32
    return %c0_i32, %c0_i32_0 : i32, i32
  }
  func.func @transform_6(%arg0: i32) -> (i32, i32) {
    %c0_i32 = arith.constant 0 : i32
    %c0_i32_0 = arith.constant 0 : i32
    %c0_i32_1 = arith.constant 0 : i32
    return %c0_i32, %c0_i32_0 : i32, i32
  }
  func.func @transform_7(%arg0: i32) -> (i32, i32) {
    %c0_i32 = arith.constant 0 : i32
    %c0_i32_0 = arith.constant 0 : i32
    %c0_i32_1 = arith.constant 0 : i32
    return %c0_i32, %c0_i32_0 : i32, i32
  }
  func.func @transform_8(%arg0: i32) -> i32 {
    %c0_i32 = arith.constant 0 : i32
    %c0_i32_0 = arith.constant 0 : i32
    return %c0_i32 : i32
  }
  func.func @transform_9(%arg0: i32) -> (i32, i32) {
    %c0_i32 = arith.constant 0 : i32
    %c0_i32_0 = arith.constant 0 : i32
    %c0_i32_1 = arith.constant 0 : i32
    return %c0_i32, %c0_i32_0 : i32, i32
  }
  func.func @transform_10(%arg0: i32) -> (i32, i32) {
    %c0_i32 = arith.constant 0 : i32
    %c0_i32_0 = arith.constant 0 : i32
    %c0_i32_1 = arith.constant 0 : i32
    return %c0_i32, %c0_i32_0 : i32, i32
  }
  func.func @transform_11(%arg0: i32) -> (i32, i32) {
    %c0_i32 = arith.constant 0 : i32
    %c0_i32_0 = arith.constant 0 : i32
    %c0_i32_1 = arith.constant 0 : i32
    return %c0_i32, %c0_i32_0 : i32, i32
  }
  func.func @transform_12(%arg0: i32) -> (i32, i32) {
    %c0_i32 = arith.constant 0 : i32
    %c0_i32_0 = arith.constant 0 : i32
    %c0_i32_1 = arith.constant 0 : i32
    return %c0_i32, %c0_i32_0 : i32, i32
  }
  func.func @transform_13(%arg0: i32) -> (i32, i32) {
    %c0_i32 = arith.constant 0 : i32
    %c0_i32_0 = arith.constant 0 : i32
    %c0_i32_1 = arith.constant 0 : i32
    return %c0_i32, %c0_i32_0 : i32, i32
  }
  func.func @transform_14(%arg0: i32) -> (i32, i32) {
    %c0_i32 = arith.constant 0 : i32
    %c0_i32_0 = arith.constant 0 : i32
    %c0_i32_1 = arith.constant 0 : i32
    return %c0_i32, %c0_i32_0 : i32, i32
  }
  func.func @transform_15(%arg0: i32) -> (i32, i32) {
    %c0_i32 = arith.constant 0 : i32
    %c0_i32_0 = arith.constant 0 : i32
    %c0_i32_1 = arith.constant 0 : i32
    return %c0_i32, %c0_i32_0 : i32, i32
  }
  func.func @transform_16(%arg0: i32) -> (i32, i32, i32) {
    %c0_i32 = arith.constant 0 : i32
    %c0_i32_0 = arith.constant 0 : i32
    %c0_i32_1 = arith.constant 0 : i32
    return %arg0, %c0_i32, %c0_i32_0 : i32, i32, i32
  }
}

</mosaic_0001>

<bundles_post_ra>
// kernel: tpu_custom_call.1
= control target key start
LH: loop header
LB: loop body
LE: loop exit
PB: predicated region body
PF: predicated region fallthrough
CT: control target
= control target key end

     0   :  { %s5448_s0 = inlined_call_operand.vmem [shape: f32[2,24,128], index: 0, kind: input, shape index: {}]   ;;  %s5449_s1 = inlined_call_operand.vmem [shape: f32[128,576], index: 1, kind: input, shape index: {}]   ;;  %s5450_s2 = inlined_call_operand.vmem [shape: f32[1,576], index: 2, kind: input, shape index: {}]   ;;  %s5451_s3 = inlined_call_operand.vmem [shape: f32[1,576], index: 3, kind: input, shape index: {}]   ;;  %s5452_s4 = inlined_call_operand.<no memory space> [shape: f32[1], index: 4, kind: input, shape index: {}]   ;;  %s5453_s5 = inlined_call_operand.vmem [shape: f32[9,512], index: 5, kind: input, shape index: {}]   ;;  %s5454_s6 = inlined_call_operand.vmem [shape: f32[1,512], index: 6, kind: input, shape index: {}]   ;;  %s5455_s7 = inlined_call_operand.vmem [shape: f32[1,512], index: 7, kind: input, shape index: {}]   ;;  %s5456_s8 = inlined_call_operand.<no memory space> [shape: f32[1], index: 8, kind: input, shape index: {}]   ;;  %s5457_s9 = inlined_call_operand.vmem [shape: f32[512,8], index: 9, kind: input, shape index: {}]   ;;  %s5458_s10 = inlined_call_operand.vmem [shape: f32[1,8], index: 10, kind: input, shape index: {}]   ;;  %s5459_s11 = inlined_call_operand.vmem [shape: f32[8,512], index: 11, kind: input, shape index: {}]   ;;  %s5460_s12 = inlined_call_operand.vmem [shape: f32[1,512], index: 12, kind: input, shape index: {}]   ;;  %s5461_s13 = inlined_call_operand.vmem [shape: f32[512,128], index: 13, kind: input, shape index: {}]   ;;  %s5462_s14 = inlined_call_operand.vmem [shape: f32[1,128], index: 14, kind: input, shape index: {}]   ;;  %s5463_s15 = inlined_call_operand.vmem [shape: f32[1,128], index: 15, kind: input, shape index: {}]   ;;  %s5464_s16 = inlined_call_operand.hbm [shape: f32[2,16,128], index: 16, kind: output, shape index: {}]  }
   0x1   :  { %5520 = sst [smem:[#allocation36_spill]] %s5448_s0 }
   0x2   :  { %5521 = sst [smem:[#allocation37_spill]] %s5449_s1 }
   0x3   :  { %21 = sst [smem:[#allocation2]] %s5452_s4 }
   0x4   :  { %22 = sst [smem:[#allocation3]] %s5456_s8 }
   0x5   :  { %23 = vsyncpa [#allocation5], 0 }
   0x6   :  { %25 = vsyncpa [#allocation5 + $0x1], 0  ;;  %s3462_s25 = smov 0   ;;  %s3464_s26 = smov 0  }
   0x7   :  { %s3466_s27 = smov 0   ;;  %s3468_s28 = smov 0  }
   0x8 LB: > { %5522 = sst [smem:[#allocation7_spill]] %s3356_s27  ;;  %s3483_s4 = sadd.s32 4294967295, %s3360_s28   ;;  %s3360_s28 = sphi %s3468_s28, %s5609_s28   ;;  %s3356_s27 = sphi %s3466_s27, %s5611_s27   ;;  %s3352_s26 = sphi %s3464_s26, %s5613_s26   ;;  %s3348_s25 = sphi %s3462_s25, %s5612_s25  }
   0x9   : > { %s2801_s8 = sadd.s32 4294967294, %s3360_s28   ;;  %s3487_s29 = sadd.s32 1, %s3360_s28  }
   0xa   : > { %5523 = sst [smem:[#allocation8_spill]] %s3487_s29  ;;  %s379_s30 = sadd.s32 1, %s3356_s27 }
   0xb   : > { %s376_s0 = ssub.s32 %s3360_s28, %s3487_s29  ;;  %p389_p0 = scmp.ne.s32.totalorder %s3356_s27, %s3352_s26 }
   0xc   : > { %p377_p1 = scmp.eq.s32.totalorder %s376_s0, 0  ;;  %p390_p2 = scmp.eq.s32.totalorder %s3483_s4, 1 }
   0xd   : > { %p395_p3 = scmp.ne.s32.totalorder %s3352_s26, %s3348_s25  ;;  %p396_p4 = scmp.eq.s32.totalorder %s2801_s8, 1 }
   0xe   : > { %s3498_s17 = scalar_select %p377_p1, %s3356_s27, %s379_s30  }
   0xf   : > { %p3500_p5 = por %p390_p2, %p389_p0  ;;  %p3504_p6 = por %p396_p4, %p395_p3 }
  0x10   : > { %5524 = sst [smem:[#allocation9_spill]] %s3498_s17  ;;  %p2804_p7 = scmp.ge.s32.totalorder %s3360_s28, 1 }
  0x11   : > { %s5526_s19 = scalar_select %p3504_p6, 1, 0 }
  0x12   : > { %p467_p8 = scmp.lt.s32.totalorder %s3360_s28, 3 }
  0x13   : > { %5527 = sst [smem:[#allocation10_spill]] %s5526_s19 }
  0x14   : > { %p468_p9 = pnand %p2804_p7, %p467_p8 }
  0x16   : > { %471 = sbr.rel (%p468_p9) target bundleno = 1255 (0x4e7), region = 84 }
  0x1d   : > { %s5528_s1 = sld [smem:[#allocation37_spill]]  ;;  %v5469_v7 = vmov 0.0   ;;  %p517_p10 = scmp.lt.s32.totalorder %s3483_s4, 1  ;;  %vm3366_vm0 = vmmov 0   ;;  %vm1078_vm1 = vcmask 261120   ;;  %vm1180_vm2 = vcmask 523264  }
  0x1e   : > { %669 = vmatprep.mubr.f32.mxu0 %v5469_v7  ;;  %752 = vmatprep.mubr.f32.mxu1 %v5469_v7  ;;  %s5533_s23 = sld [smem:[#allocation36_spill]]  ;;  %s3363_s30 = smov 32   ;;  %vm1293_vm15 = vcmask 1046528  }
  0x1f   : > { %s3683_s29 = scalar_select %p517_p10, %s3483_s4, 1 }
  0x20   : > { %s3365_s17 = smov 64   ;;  %s935_s8 = sld [smem:[#allocation2]] }
  0x21   : > { %s3243_s19 = smul.u32 24, %s3683_s29  ;;  %s5518_s22 = smov 96  }
  0x22   : > { %s2007_s20 = sld [smem:[#allocation3]] }
  0x23   : > { %v526_v0 = vld [vmem:[%s5528_s1 + $0x8] sm:$0xff]  ;;  %v531_v1 = vld [vmem:[%s5528_s1 + $0x30] sm:$0xff]  ;;  %v528_v2 = vld [vmem:[%s5528_s1 + $0x18] sm:$0xff] }
  0x24   : > { %v3027_v3 = vpack.c.bf16 %v531_v1, %v526_v0  ;;  %v533_v4 = vld [vmem:[%s5528_s1 + $0x40] sm:$0xff]  ;;  %v530_v6 = vld [vmem:[%s5528_s1 + $0x28] sm:$0xff]  ;;  %v527_v10 = vld [vmem:[%s5528_s1 + $0x10] sm:$0xff]  ;;  %v853_v0 = vlaneseq  ;;  %s3741_s24 = scalar_lea.vmem %s5533_s23, %s3243_s19 }
  0x25   : > { %v525_v5 = vld [vmem:[%s5528_s1] sm:$0xff]  ;;  %v3059_v8 = vpack.c.bf16 %v533_v4, %v528_v2  ;;  %v532_v11 = vld [vmem:[%s5528_s1 + $0x38] sm:$0xff]  ;;  %v538_v15 = vld [vmem:[%s5528_s1 + $0x68] sm:$0xff] }
  0x26   : > { %v3029_v9 = vpack.c.bf16 %v530_v6, %v525_v5  ;;  %v536_v12 = vld [vmem:[%s5528_s1 + $0x58] sm:$0xff]  ;;  %3028 = vmatprep.subr.bf16.mxu0 %v3027_v3  ;;  %v3061_v13 = vpack.c.bf16 %v532_v11, %v527_v10  ;;  %v541_v14 = vld [vmem:[%s5528_s1 + $0x80] sm:$0xff]  ;;  %v543_v16 = vld [vmem:[%s5528_s1 + $0x90] sm:$0xff] }
  0x27   : > { %3060 = vmatprep.subr.bf16.mxu1 %v3059_v8  ;;  %v3031_v17 = vpack.c.bf16 %v541_v14, %v536_v12  ;;  %v3063_v18 = vpack.c.bf16 %v543_v16, %v538_v15  ;;  %v535_v19 = vld [vmem:[%s5528_s1 + $0x50] sm:$0xff]  ;;  %v540_v20 = vld [vmem:[%s5528_s1 + $0x78] sm:$0xff]  ;;  %v537_v21 = vld [vmem:[%s5528_s1 + $0x60] sm:$0xff]  ;;  %v3669_v14 = vshrl.u32 %v853_v0, 7 }
  0x28   : > { %3030 = vmatpush1.bf16.msra.mxu0 %v3029_v9  ;;  %3062 = vmatpush1.bf16.msra.mxu1 %v3061_v13  ;;  %v3033_v22 = vpack.c.bf16 %v540_v20, %v535_v19  ;;  %v542_v23 = vld [vmem:[%s5528_s1 + $0x88] sm:$0xff]  ;;  %v551_v25 = vld [vmem:[%s5528_s1 + $0xd0] sm:$0xff]  ;;  %v548_v28 = vld [vmem:[%s5528_s1 + $0xb8] sm:$0xff] }
  0x29   : > { %v546_v24 = vld [vmem:[%s5528_s1 + $0xa8] sm:$0xff]  ;;  %3032 = vmatprep.subr.bf16.mxu0 %v3031_v17  ;;  %3064 = vmatprep.subr.bf16.mxu1 %v3063_v18  ;;  %v3065_v26 = vpack.c.bf16 %v542_v23, %v537_v21  ;;  %v553_v29 = vld [vmem:[%s5528_s1 + $0xe0] sm:$0xff]  ;;  %v547_v33 = vld [vmem:[%s5528_s1 + $0xb0] sm:$0xff]  ;;  %vm986_vm3 = vcmp.ge.s32.totalorder %v3669_v14, 1 }
  0x2a   : > { %v3035_v27 = vpack.c.bf16 %v551_v25, %v546_v24  ;;  %v545_v30 = vld [vmem:[%s5528_s1 + $0xa0] sm:$0xff]  ;;  %v3067_v31 = vpack.c.bf16 %v553_v29, %v548_v28  ;;  %v550_v32 = vld [vmem:[%s5528_s1 + $0xc8] sm:$0xff]  ;;  %v552_v34 = vld [vmem:[%s5528_s1 + $0xd8] sm:$0xff] }
  0x2b   : > { %v3037_v35 = vpack.c.bf16 %v550_v32, %v545_v30  ;;  %v556_v36 = vld [vmem:[%s5528_s1 + $0xf8] sm:$0xff]  ;;  %v561_v37 = vld [vmem:[%s5528_s1 + $0x120] sm:$0xff]  ;;  %v558_v38 = vld [vmem:[%s5528_s1 + $0x108] sm:$0xff]  ;;  %v3069_v39 = vpack.c.bf16 %v552_v34, %v547_v33 }
  0x2c   : > { %3034 = vmatpush1.bf16.msra.mxu0 %v3033_v22  ;;  %3066 = vmatpush1.bf16.msra.mxu1 %v3065_v26  ;;  %v3039_v40 = vpack.c.bf16 %v561_v37, %v556_v36  ;;  %v563_v41 = vld [vmem:[%s5528_s1 + $0x130] sm:$0xff]  ;;  %v560_v43 = vld [vmem:[%s5528_s1 + $0x118] sm:$0xff]  ;;  %v557_v45 = vld [vmem:[%s5528_s1 + $0x100] sm:$0xff] }
  0x2d   : > { %3036 = vmatprep.subr.bf16.mxu0 %v3035_v27  ;;  %v555_v42 = vld [vmem:[%s5528_s1 + $0xf0] sm:$0xff]  ;;  %3068 = vmatprep.subr.bf16.mxu1 %v3067_v31  ;;  %v3071_v44 = vpack.c.bf16 %v563_v41, %v558_v38  ;;  %v562_v46 = vld [vmem:[%s5528_s1 + $0x128] sm:$0xff]  ;;  %v568_v49 = vld [vmem:[%s5528_s1 + $0x158] sm:$0xff]  ;;  %v3701_v27 = vsub.s32 1, %v3669_v14 }
  0x2e   : > { %v566_v47 = vld [vmem:[%s5528_s1 + $0x148] sm:$0xff]  ;;  %v571_v48 = vld [vmem:[%s5528_s1 + $0x170] sm:$0xff]  ;;  %v573_v50 = vld [vmem:[%s5528_s1 + $0x180] sm:$0xff]  ;;  %v3041_v51 = vpack.c.bf16 %v560_v43, %v555_v42  ;;  %v3073_v52 = vpack.c.bf16 %v562_v46, %v557_v45  ;;  %v3755_v46 = vsub.s32 2, %v3669_v14 }
  0x2f   : > { %v3043_v53 = vpack.c.bf16 %v571_v48, %v566_v47  ;;  %v565_v54 = vld [vmem:[%s5528_s1 + $0x140] sm:$0xff]  ;;  %v570_v55 = vld [vmem:[%s5528_s1 + $0x168] sm:$0xff]  ;;  %v567_v56 = vld [vmem:[%s5528_s1 + $0x150] sm:$0xff]  ;;  %v3075_v57 = vpack.c.bf16 %v573_v50, %v568_v49  ;;  %5529 = vst [vmem:[#allocation11_spill] sm:$0xff] %v3701_v27  ;;  %v3364_v50 = vmov 0.0|0.0  }
  0x30   : > { %3038 = vmatpush1.bf16.msra.mxu0 %v3037_v35  ;;  %3070 = vmatpush1.bf16.msra.mxu1 %v3069_v39  ;;  %v572_v58 = vld [vmem:[%s5528_s1 + $0x178] sm:$0xff]  ;;  %v581_v60 = vld [vmem:[%s5528_s1 + $0x1c0] sm:$0xff]  ;;  %v578_v61 = vld [vmem:[%s5528_s1 + $0x1a8] sm:$0xff]  ;;  %v3045_v63 = vpack.c.bf16 %v570_v55, %v565_v54  ;;  %5534 = vst [vmem:[#allocation15_spill] sm:$0xff] %v3755_v46  ;;  %v3778_v55 = vsub.s32 4, %v3669_v14 }
  0x31   : > { %3040 = vmatprep.subr.bf16.mxu0 %v3039_v40  ;;  %3072 = vmatprep.subr.bf16.mxu1 %v3071_v44  ;;  %v576_v59 = vld [vmem:[%s5528_s1 + $0x198] sm:$0xff]  ;;  %v583_v62 = vld [vmem:[%s5528_s1 + $0x1d0] sm:$0xff]  ;;  %v3077_v1 = vpack.c.bf16 %v572_v58, %v567_v56  ;;  %v577_v5 = vld [vmem:[%s5528_s1 + $0x1a0] sm:$0xff] }
  0x32   : > { %v3047_v2 = vpack.c.bf16 %v581_v60, %v576_v59  ;;  %v575_v3 = vld [vmem:[%s5528_s1 + $0x190] sm:$0xff]  ;;  %v580_v4 = vld [vmem:[%s5528_s1 + $0x1b8] sm:$0xff]  ;;  %v3079_v6 = vpack.c.bf16 %v583_v62, %v578_v61  ;;  %v582_v8 = vld [vmem:[%s5528_s1 + $0x1c8] sm:$0xff] }
  0x33   : > { %v586_v9 = vld [vmem:[%s5528_s1 + $0x1e8] sm:$0xff]  ;;  %v591_v10 = vld [vmem:[%s5528_s1 + $0x210] sm:$0xff]  ;;  %v588_v11 = vld [vmem:[%s5528_s1 + $0x1f8] sm:$0xff]  ;;  %v3049_v13 = vpack.c.bf16 %v580_v4, %v575_v3  ;;  %v3081_v15 = vpack.c.bf16 %v582_v8, %v577_v5 }
  0x34   : > { %3042 = vmatpush1.bf16.msra.mxu0 %v3041_v51  ;;  %3074 = vmatpush1.bf16.msra.mxu1 %v3073_v52  ;;  %v593_v12 = vld [vmem:[%s5528_s1 + $0x220] sm:$0xff]  ;;  %v3051_v16 = vpack.c.bf16 %v591_v10, %v586_v9  ;;  %v590_v18 = vld [vmem:[%s5528_s1 + $0x208] sm:$0xff]  ;;  %v587_v19 = vld [vmem:[%s5528_s1 + $0x1f0] sm:$0xff]  ;;  %v1467_v9 = vsub.s32 5, %v3669_v14 }
  0x35   : > { %3044 = vmatprep.subr.bf16.mxu0 %v3043_v53  ;;  %3076 = vmatprep.subr.bf16.mxu1 %v3075_v57  ;;  %v585_v17 = vld [vmem:[%s5528_s1 + $0x1e0] sm:$0xff]  ;;  %v3083_v20 = vpack.c.bf16 %v593_v12, %v588_v11  ;;  %v592_v21 = vld [vmem:[%s5528_s1 + $0x218] sm:$0xff]  ;;  %v598_v24 = vld [vmem:[%s5528_s1 + $0x248] sm:$0xff] }
  0x36   : > { %v596_v22 = vld [vmem:[%s5528_s1 + $0x238] sm:$0xff]  ;;  %v601_v23 = vld [vmem:[%s5528_s1 + $0x260] sm:$0xff]  ;;  %v603_v25 = vld [vmem:[%s5528_s1 + $0x270] sm:$0xff]  ;;  %v3053_v26 = vpack.c.bf16 %v590_v18, %v585_v17  ;;  %v3085_v28 = vpack.c.bf16 %v592_v21, %v587_v19  ;;  %v1679_v21 = vsub.s32 7, %v3669_v14 }
  0x37   : > { %v3055_v29 = vpack.c.bf16 %v601_v23, %v596_v22  ;;  %v595_v30 = vld [vmem:[%s5528_s1 + $0x230] sm:$0xff]  ;;  %v600_v31 = vld [vmem:[%s5528_s1 + $0x258] sm:$0xff]  ;;  %v3087_v32 = vpack.c.bf16 %v603_v25, %v598_v24  ;;  %v597_v33 = vld [vmem:[%s5528_s1 + $0x240] sm:$0xff] }
  0x38   : > { %3046 = vmatpush1.bf16.msra.mxu0 %v3045_v63  ;;  %3078 = vmatpush1.bf16.msra.mxu1 %v3077_v1  ;;  %v602_v34 = vld [vmem:[%s5528_s1 + $0x268] sm:$0xff]  ;;  %v3719_v35 = vld [vmem:[%s5453_s5] sm:$0xff]  ;;  %v3057_v36 = vpack.c.bf16 %v600_v31, %v595_v30  ;;  %v3726_v38 = vld [vmem:[%s5453_s5 + $0x10] sm:$0xff] }
  0x39   : > { %3048 = vmatprep.subr.bf16.mxu0 %v3047_v2  ;;  %3080 = vmatprep.subr.bf16.mxu1 %v3079_v6  ;;  %5530 = vst [vmem:[#allocation12_spill] sm:$0xff] %v3719_v35  ;;  %v1053_v37 = vrot.slane %v3719_v35, %v3701_v27  ;;  %5531 = vst [vmem:[#allocation13_spill] sm:$0xff] %v3726_v38  ;;  %v3731_v39 = vld [vmem:[%s5453_s5 + $0x8] sm:$0xff]  ;;  %v3736_v40 = vld [vmem:[%s5453_s5 + $0x18] sm:$0xff]  ;;  %v3089_v41 = vpack.c.bf16 %v602_v34, %v597_v33 }
  0x3a   : > { %5532 = vst [vmem:[#allocation14_spill] sm:$0xff] %v3731_v39  ;;  %v529_v42 = vld [vmem:[%s5528_s1 + $0x20] sm:$0xff]  ;;  %v534_v43 = vld [vmem:[%s5528_s1 + $0x48] sm:$0xff]  ;;  %v1061_v44 = vrot.slane %v3726_v38, %v3701_v27  ;;  %v1057_v45 = vrot.slane %v3731_v39, %v3701_v27  ;;  %v1065_v47 = vrot.slane %v3736_v40, %v3701_v27  ;;  %v539_v51 = vld [vmem:[%s5528_s1 + $0x70] sm:$0xff]  ;;  %v1155_v53 = vrot.slane %v3719_v35, %v3755_v46 }
  0x3b   : > { %1070 = vrot.lane.b32.xlu0 %v1053_v37, %s3363_s30  ;;  %v3761_v48 = vld [vmem:[%s3741_s24] sm:$0xff]  ;;  %v3092_v49 = vpack.c.bf16 %v534_v43, %v529_v42  ;;  %v544_v52 = vld [vmem:[%s5528_s1 + $0x98] sm:$0xff]  ;;  %v1159_v54 = vrot.slane %v3731_v39, %v3755_v46  ;;  %v3782_v56 = vld [vmem:[%s3741_s24 + $0x8] sm:$0xff]  ;;  %v1163_v60 = vrot.slane %v3726_v38, %v3755_v46  ;;  %v1333_v61 = vrot.slane %v3719_v35, %v3778_v55 }
  0x3c   : > { %3050 = vmatpush1.bf16.msra.mxu0 %v3049_v13  ;;  %3082 = vmatpush1.bf16.msra.mxu1 %v3081_v15  ;;  %v3095_v57 = vpack.c.bf16 %v544_v52, %v539_v51  ;;  %v549_v58 = vld [vmem:[%s5528_s1 + $0xc0] sm:$0xff]  ;;  %v554_v59 = vld [vmem:[%s5528_s1 + $0xe8] sm:$0xff]  ;;  %v3802_v62 = vld [vmem:[%s3741_s24 + $0x10] sm:$0xff]  ;;  %v1337_v2 = vrot.slane %v3731_v39, %v3778_v55  ;;  %v1341_v3 = vrot.slane %v3726_v38, %v3778_v55 }
  0x3d   : > { %3052 = vmatprep.subr.bf16.mxu0 %v3051_v16  ;;  %3084 = vmatprep.subr.bf16.mxu1 %v3083_v20  ;;  %v3098_v63 = vpack.c.bf16 %v554_v59, %v549_v58  ;;  %v559_v0 = vld [vmem:[%s5528_s1 + $0x110] sm:$0xff]  ;;  %v564_v1 = vld [vmem:[%s5528_s1 + $0x138] sm:$0xff]  ;;  %v569_v5 = vld [vmem:[%s5528_s1 + $0x160] sm:$0xff]  ;;  %v1167_v8 = vrot.slane %v3736_v40, %v3755_v46  ;;  %v1345_v10 = vrot.slane %v3736_v40, %v3778_v55  ;;  %v3920_v59 = vsub.s32 0, %v3669_v14 }
  0x3e   : > { %1074 = vrot.lane.b32.xlu1 %v1061_v44, %s3363_s30  ;;  %v3101_v4 = vpack.c.bf16 %v564_v1, %v559_v0  ;;  %v574_v6 = vld [vmem:[%s5528_s1 + $0x188] sm:$0xff]  ;;  %v579_v12 = vld [vmem:[%s5528_s1 + $0x1b0] sm:$0xff]  ;;  %v584_v13 = vld [vmem:[%s5528_s1 + $0x1d8] sm:$0xff]  ;;  %v1468_v15 = vrot.slane %v3719_v35, %v1467_v9  ;;  %v1472_v16 = vrot.slane %v3731_v39, %v1467_v9  ;;  %v1476_v20 = vrot.slane %v3726_v38, %v1467_v9 }
  0x3f   : > { %1072 = vrot.lane.b32.xlu0 %v1057_v45, %s3363_s30  ;;  %v3104_v11 = vpack.c.bf16 %v574_v6, %v569_v5  ;;  %v3107_v17 = vpack.c.bf16 %v584_v13, %v579_v12  ;;  %v589_v18 = vld [vmem:[%s5528_s1 + $0x200] sm:$0xff]  ;;  %v594_v19 = vld [vmem:[%s5528_s1 + $0x228] sm:$0xff]  ;;  %v1480_v22 = vrot.slane %v3736_v40, %v1467_v9  ;;  %v599_v24 = vld [vmem:[%s5528_s1 + $0x250] sm:$0xff]  ;;  %v1688_v30 = vrot.slane %v3726_v38, %v1679_v21 }
  0x40   : > { %3054 = vmatpush1.bf16.msra.mxu0 %v3053_v26  ;;  %3086 = vmatpush1.bf16.msra.mxu1 %v3085_v28  ;;  %v3110_v23 = vpack.c.bf16 %v594_v19, %v589_v18  ;;  %v604_v25 = vld [vmem:[%s5528_s1 + $0x278] sm:$0xff]  ;;  %v1680_v26 = vrot.slane %v3719_v35, %v1679_v21  ;;  %v1684_v28 = vrot.slane %v3731_v39, %v1679_v21  ;;  %v2808_v33 = vld [vmem:[%s5453_s5 + $0x28] ss:$0 sm:$0xff]  ;;  %v2809_v34 = vld [vmem:[%s5453_s5 + $0x30] ss:$0 sm:$0xff]  ;;  %v3965_v12 = vadd.s32 16, %v3669_v14 }
  0x41   : > { %3056 = vmatprep.subr.bf16.mxu0 %v3055_v29  ;;  %3088 = vmatprep.subr.bf16.mxu1 %v3087_v32  ;;  %v3113_v29 = vpack.c.bf16 %v604_v25, %v599_v24  ;;  %v1692_v31 = vrot.slane %v3736_v40, %v1679_v21  ;;  %v2807_v32 = vld [vmem:[%s5453_s5 + $0x20] ss:$0 sm:$0xff]  ;;  %5539 = vst [vmem:[#allocation20_spill] sm:$0xff] %v3920_v59 }
  0x42   : > { %1076 = vrot.lane.b32.xlu1 %v1065_v47, %s3363_s30  ;;  %v893_v0 = vld [vmem:[%s5451_s3] sm:$0x1f]  ;;  %vm991_vm8 = vcmp.lt.s32.totalorder %v3965_v12, 17 }
  0x43   : > { %1172 = vrot.lane.b32.xlu0 %v1155_v53, %s3365_s17  ;;  %v3946_v5 = vrot.slane %v893_v0, %v3920_v59  ;;  %v3949_v6 = vrot.slane %v893_v0, %v3755_v46  ;;  %v3994_v24 = vrot.slane %v893_v0, %v3778_v55 }
  0x44   : > { %3058 = vmatpush1.bf16.msra.mxu0 %v3057_v36  ;;  %3090 = vmatpush1.bf16.msra.mxu1 %v3089_v41  ;;  %v2810_v36 = vld [vmem:[%s5453_s5 + $0x38] ss:$0 sm:$0xff] }
  0x45   : > { %3091 = vmatprep.subr.bf16.mxu0 %v3364_v50 }
  0x46   : > { %1174 = vrot.lane.b32.xlu1 %v1159_v54, %s3365_s17 }
  0x47   : > { %670 = vmatmul.mubr.f32.vlgmr.msra.gmra.mrb[0].mxu0 %v3761_v48  ;;  %753 = vmatmul.mubr.f32.vlgmr.msra.gmra.mrb[0].mxu1 %v3761_v48 }
  0x48   : > { %3093 = vmatpush3.bf16.msra.mxu0 %v3092_v49  ;;  %675 = vmatprep.mubr.f32.mxu0 %v5469_v7 }
  0x49   : > { %758 = vmatprep.mubr.f32.mxu1 %v5469_v7  ;;  %3094 = vmatprep.subr.bf16.mxu0 %v3364_v50 }
  0x4a   : > { %1176 = vrot.lane.b32.xlu0 %v1163_v60, %s3365_s17  ;;  %1350 = vrot.lane.b32.xlu1 %v1333_v61, %s3363_s30  ;;  %v3923_v60 = vsub.s32 3, %v3669_v14 }
  0x4b   : > { %676 = vmatmul.mubr.f32.gmra.mrb[2].mxu0 %v3782_v56  ;;  %759 = vmatmul.mubr.f32.gmra.mrb[2].mxu1 %v3782_v56 }
  0x4c   : > { %3096 = vmatpush3.bf16.msra.mxu0 %v3095_v57  ;;  %681 = vmatprep.mubr.f32.mxu0 %v5469_v7  ;;  %5540 = vst [vmem:[#allocation21_spill] sm:$0xff] %v3923_v60  ;;  %v3955_v9 = vrot.slane %v893_v0, %v3923_v60 }
  0x4d   : > { %764 = vmatprep.mubr.f32.mxu1 %v5469_v7  ;;  %3097 = vmatprep.subr.bf16.mxu0 %v3364_v50 }
  0x4e   : > { %1352 = vrot.lane.b32.xlu0 %v1337_v2, %s3363_s30  ;;  %1354 = vrot.lane.b32.xlu1 %v1341_v3, %s3363_s30 }
  0x4f   : > { %682 = vmatmul.mubr.f32.gmra.mrb[4].mxu0 %v3802_v62  ;;  %765 = vmatmul.mubr.f32.gmra.mrb[4].mxu1 %v3802_v62 }
  0x50   : > { %3099 = vmatpush3.bf16.msra.mxu0 %v3098_v63  ;;  %3018 = vmatprep.mubr.msk.f32.mxu0 %vm3366_vm0, %v5469_v7 }
  0x51   : > { %3100 = vmatprep.subr.bf16.mxu0 %v3364_v50 }
  0x52   : > { %1178 = vrot.lane.b32.xlu0 %v1167_v8, %s3365_s17  ;;  %1356 = vrot.lane.b32.xlu1 %v1345_v10, %s3363_s30  ;;  %v3952_v8 = vrot.slane %v893_v0, %v3701_v27 }
  0x54   : > { %3102 = vmatpush3.bf16.msra.mxu0 %v3101_v4 }
  0x55   : > { %3103 = vmatprep.subr.bf16.mxu0 %v3364_v50 }
  0x56   : > { %1485 = vrot.lane.b32.xlu0 %v1468_v15, %s3365_s17  ;;  %1487 = vrot.lane.b32.xlu1 %v1472_v16, %s3365_s17 }
  0x58   : > { %3105 = vmatpush3.bf16.msra.mxu0 %v3104_v11  ;;  %v3961_v11 = vstv %s935_s8 }
  0x59   : > { %3106 = vmatprep.subr.bf16.mxu0 %v3364_v50 }
  0x5a   : > { %1489 = vrot.lane.b32.xlu0 %v1476_v20, %s3365_s17  ;;  %1491 = vrot.lane.b32.xlu1 %v1480_v22, %s3365_s17 }
  0x5c   : > { %3108 = vmatpush3.bf16.msra.mxu0 %v3107_v17 }
  0x5d   : > { %3109 = vmatprep.subr.bf16.mxu0 %v3364_v50 }
  0x5e   : > { %1697 = vrot.lane.b32.xlu0 %v1680_v26, %s3363_s30  ;;  %1699 = vrot.lane.b32.xlu1 %v1684_v28, %s3363_s30 }
  0x60   : > { %3111 = vmatpush3.bf16.msra.mxu0 %v3110_v23 }
  0x61   : > { %3112 = vmatprep.subr.bf16.mxu0 %v3364_v50 }
  0x62   : > { %1701 = vrot.lane.b32.xlu0 %v1688_v30, %s3363_s30  ;;  %1703 = vrot.lane.b32.xlu1 %v1692_v31, %s3363_s30  ;;  %s2820_s30 = sshll.u32 %s3483_s4, 8  ;;  %s3368_s4 = smov [#allocation4]  }
  0x63   : > { %s5403_s0 = scalar_lea.hbm %s5464_s16, %s2820_s30  ;;  %s3302_s21 = sshll.u32 %s3368_s4, 4  ;;  %s3303_s21 = int_to_ptr.vmem [resolvable:$false] %s3302_s21 }
  0x64   : > { %3114 = vmatpush3.bf16.msra.mxu0 %v3113_v29 }
  0x66   : > { %1832 = vrot.lane.b32.xlu0 %v2807_v32, %s3365_s17  ;;  %1834 = vrot.lane.b32.xlu1 %v2808_v33, %s3365_s17 }
  0x67   : > { %3019 = vmatmul.mubr.f32.vlgmr.msra.gmra.mrb[6].mxu0 %v3761_v48 }
  0x68   : > { %3021 = vmatprep.mubr.msk.f32.mxu0 %vm3366_vm0, %v5469_v7 }
  0x6a   : > { %1836 = vrot.lane.b32.xlu0 %v2809_v34, %s3365_s17  ;;  %1838 = vrot.lane.b32.xlu1 %v2810_v36, %s3365_s17 }
  0x6b   : > { %3022 = vmatmul.mubr.f32.gmra.mrb[8].mxu0 %v3782_v56 }
  0x6c   : > { %3024 = vmatprep.mubr.msk.f32.mxu0 %vm3366_vm0, %v5469_v7 }
  0x6f   : > { %3025 = vmatmul.mubr.f32.gmra.mrb[10].mxu0 %v3802_v62  ;;  %v851_v62 = vld [vmem:[%s5450_s2] sm:$0x1f] }
  0x70   : > { %v3934_v1 = vrot.slane %v851_v62, %v3920_v59  ;;  %v3937_v2 = vrot.slane %v851_v62, %v3755_v46  ;;  %v3940_v3 = vrot.slane %v851_v62, %v3701_v27  ;;  %v3943_v4 = vrot.slane %v851_v62, %v3923_v60 }
  0x71   : > { %v3991_v23 = vrot.slane %v851_v62, %v3778_v55  ;;  %v4035_v62 = vrot.slane %v3719_v35, %v3923_v60 }
  0x73   : > { %5542 = vst [vmem:[#allocation23_spill] sm:$0xff] %v4035_v62 }
  0xad   : > { %v3901_v37 = vpop.permute.xlu0 %1070 }
  0xb0   : > { %v1075_v40 = vpop.permute.xlu1 %1074 }
  0xb1   : > { %v1073_v41 = vpop.permute.xlu0 %1072 }
  0xb2   : > { %v3959_v10 = vsel %vm1078_vm1, %v3901_v37, %v1073_v41  ;;  %v3968_v13 = vsel %vm1078_vm1, %v1073_v41, %v1075_v40 }
  0xb4   : > { %v3903_v42 = vpop.permute.xlu1 %1076 }
  0xb5   : > { %5535 = vst [vmem:[#allocation16_spill] sm:$0xff] %v3903_v42  ;;  %v3905_v43 = vpop.permute.xlu0 %1172  ;;  %v3972_v15 = vsel %vm1078_vm1, %v1075_v40, %v3903_v42  ;;  %v4052_v42 = vrot.slane %v3731_v39, %v3923_v60 }
  0xb7   : > { %5544 = vst [vmem:[#allocation25_spill] sm:$0xff] %v4052_v42 }
  0xb8   : > { %v1175_v44 = vpop.permute.xlu1 %1174 }
  0xb9   : > { %v3976_v16 = vsel %vm1180_vm2, %v3905_v43, %v1175_v44 }
  0xbc   : > { %v1177_v45 = vpop.permute.xlu0 %1176  ;;  %v3907_v47 = vpop.permute.xlu1 %1350 }
  0xbd   : > { %v3979_v17 = vsel %vm1180_vm2, %v1175_v44, %v1177_v45 }
  0xc0   : > { %v1353_v48 = vpop.permute.xlu0 %1352  ;;  %v1355_v49 = vpop.permute.xlu1 %1354 }
  0xc1   : > { %v3985_v19 = vsel %vm1078_vm1, %v3907_v47, %v1353_v48  ;;  %v3988_v20 = vsel %vm1078_vm1, %v1353_v48, %v1355_v49 }
  0xc4   : > { %v3909_v50 = vpop.permute.xlu0 %1178  ;;  %v3911_v51 = vpop.permute.xlu1 %1356 }
  0xc5   : > { %5536 = vst [vmem:[#allocation17_spill] sm:$0xff] %v3909_v50  ;;  %5537 = vst [vmem:[#allocation18_spill] sm:$0xff] %v3911_v51  ;;  %v3998_v25 = vsel %vm1180_vm2, %v1177_v45, %v3909_v50  ;;  %v4002_v26 = vsel %vm1078_vm1, %v1355_v49, %v3911_v51 }
  0xc8   : > { %v3913_v52 = vpop.permute.xlu0 %1485  ;;  %v1488_v53 = vpop.permute.xlu1 %1487 }
  0xc9   : > { %v4006_v28 = vsel %vm1180_vm2, %v3913_v52, %v1488_v53 }
  0xcc   : > { %v1490_v54 = vpop.permute.xlu0 %1489  ;;  %v3915_v56 = vpop.permute.xlu1 %1491 }
  0xcd   : > { %5538 = vst [vmem:[#allocation19_spill] sm:$0xff] %v3915_v56  ;;  %v4010_v32 = vsel %vm1180_vm2, %v1488_v53, %v1490_v54  ;;  %v4014_v55 = vsel %vm1180_vm2, %v1490_v54, %v3915_v56 }
  0xd0   : > { %v3917_v57 = vpop.permute.xlu0 %1697  ;;  %v1700_v58 = vpop.permute.xlu1 %1699 }
  0xd1   : > { %v4020_v40 = vsel %vm1078_vm1, %v3917_v57, %v1700_v58 }
  0xd4   : > { %v1702_v61 = vpop.permute.xlu0 %1701  ;;  %v3928_v63 = vpop.permute.xlu1 %1703 }
  0xd5   : > { %5541 = vst [vmem:[#allocation22_spill] sm:$0xff] %v3928_v63  ;;  %v4023_v41 = vsel %vm1078_vm1, %v1700_v58, %v1702_v61  ;;  %v4029_v48 = vsel %vm1078_vm1, %v1702_v61, %v3928_v63 }
  0xd8   : > { %v3981_v18 = vpop.permute.xlu0 %1832  ;;  %v1835_v22 = vpop.permute.xlu1 %1834 }
  0xd9   : > { %v4045_v7 = vsel %vm1180_vm2, %v3981_v18, %v1835_v22 }
  0xdc   : > { %v4047_v46 = vpop.permute.xlu1 %1838 }
  0xdd   : > { %5543 = vst [vmem:[#allocation24_spill] sm:$0xff] %v4047_v46 }
 0x11a   : > { %v671_v21 = vpop.f32.mrb[0].mxu0  ;;  %v754_v30 = vpop.f32.mrb[0].mxu1 }
 0x11b   : > { %v878_v29 = vmul.f32 %v3934_v1, %v671_v21  ;;  %v673_v31 = vpop.f32.mrb[1].mxu0  ;;  %v880_v33 = vmul.f32 %v3937_v2, %v754_v30  ;;  %v756_v36 = vpop.f32.mrb[1].mxu1 }
 0x11c   : > { %v879_v34 = vmul.f32 %v3940_v3, %v673_v31  ;;  %v881_v45 = vmul.f32 %v3943_v4, %v756_v36 }
 0x11d   : > { %v920_v44 = vadd.f32 %v3946_v5, %v878_v29  ;;  %v922_v49 = vadd.f32 %v3949_v6, %v880_v33 }
 0x11e   : > { %v921_v53 = vadd.f32 %v3952_v8, %v879_v34  ;;  %v677_v54 = vpop.f32.mrb[2].mxu0  ;;  %v923_v0 = vadd.f32 %v3955_v9, %v881_v45  ;;  %v760_v29 = vpop.f32.mrb[2].mxu1 }
 0x11f   : > { %vm936_vm4 = vcmp.ge.f32.partialorder %v920_v44, 0.0  ;;  %v952_v58 = vmul.f32 %v3961_v11, %v920_v44  ;;  %v883_v21 = vmul.f32 %v3934_v1, %v677_v54  ;;  %v679_v30 = vpop.f32.mrb[3].mxu0  ;;  %vm938_vm5 = vcmp.ge.f32.partialorder %v922_v49, 0.0  ;;  %v762_v33 = vpop.f32.mrb[3].mxu1 }
 0x120   : > { %v954_v61 = vmul.f32 %v3961_v11, %v922_v49  ;;  %vm937_vm6 = vcmp.ge.f32.partialorder %v921_v53, 0.0  ;;  %v953_v31 = vmul.f32 %v3961_v11, %v921_v53  ;;  %vm939_vm7 = vcmp.ge.f32.partialorder %v923_v0, 0.0  ;;  %v1837_v45 = vpop.permute.xlu0 %1836 }
 0x121   : > { %v967_v34 = vsel %vm936_vm4, %v920_v44, %v952_v58  ;;  %v955_v36 = vmul.f32 %v3961_v11, %v923_v0  ;;  %v885_v59 = vmul.f32 %v3937_v2, %v760_v29  ;;  %v925_v29 = vadd.f32 %v3946_v5, %v883_v21 }
 0x122   : > { %v969_v54 = vsel %vm938_vm5, %v922_v49, %v954_v61  ;;  %v968_v27 = vsel %vm937_vm6, %v921_v53, %v953_v31  ;;  %v683_v50 = vpop.f32.mrb[4].mxu0  ;;  %v4056_v44 = vsel %vm986_vm3, %v967_v34, 0.0  ;;  %v766_v62 = vpop.f32.mrb[4].mxu1  ;;  %v4063_v49 = vsub.s32 6, %v3669_v14 }
 0x123   : > { %v4060_v58 = vsel %vm986_vm3, %v968_v27, 0.0  ;;  %v970_v38 = vsel %vm939_vm7, %v923_v0, %v955_v36  ;;  %v685_v35 = vpop.f32.mrb[5].mxu0  ;;  %v4067_v53 = vsel %vm986_vm3, %v969_v54, 0.0  ;;  %v4071_v61 = vsel %vm1180_vm2, %v1835_v22, %v1837_v45  ;;  %v768_v27 = vpop.f32.mrb[5].mxu1 }
 0x124   : > { %5545 = vst [vmem:[#allocation26_spill] sm:$0xff] %v4060_v58  ;;  %5546 = vst [vmem:[#allocation27_spill] sm:$0xff] %v4063_v49  ;;  %v4075_v31 = vsel %vm1180_vm2, %v1837_v45, %v4047_v46  ;;  %v4079_v0 = vmul.f32 %v4045_v7, %v4060_v58  ;;  %v927_v34 = vadd.f32 %v3949_v6, %v885_v59  ;;  %v4087_v22 = vsel %vm986_vm3, %v970_v38, 0.0 }
 0x125   : > { %5547 = vst [vmem:[#allocation28_spill] sm:$0xff] %v4067_v53  ;;  %v884_v36 = vmul.f32 %v3940_v3, %v679_v30  ;;  %v886_v54 = vmul.f32 %v3943_v4, %v762_v33  ;;  %5549 = vst [vmem:[#allocation30_spill] sm:$0xff] %v4087_v22  ;;  %v4091_v21 = vmul.f32 %v3981_v18, %v4056_v44  ;;  %vm941_vm10 = vcmp.ge.f32.partialorder %v925_v29, 0.0 }
 0x126   : > { %5548 = vst [vmem:[#allocation29_spill] sm:$0xff] %v4079_v0  ;;  %v888_v45 = vmul.f32 %v3934_v1, %v683_v50  ;;  %v890_v60 = vmul.f32 %v3937_v2, %v766_v62  ;;  %vm943_vm9 = vcmp.ge.f32.partialorder %v927_v34, 0.0  ;;  %v959_v59 = vmul.f32 %v3961_v11, %v927_v34 }
 0x127   : > { %v926_v30 = vadd.f32 %v3952_v8, %v884_v36  ;;  %v928_v33 = vadd.f32 %v3955_v9, %v886_v54  ;;  %v957_v42 = vmul.f32 %v3961_v11, %v925_v29  ;;  %v889_v49 = vmul.f32 %v3940_v3, %v685_v35 }
 0x128   : > { %v930_v38 = vadd.f32 %v3946_v5, %v888_v45  ;;  %v932_v39 = vadd.f32 %v3949_v6, %v890_v60  ;;  %v4103_v50 = vsel %vm943_vm9, %v927_v34, %v959_v59  ;;  %v4107_v1 = vmul.f32 %v4071_v61, %v4067_v53 }
 0x129   : > { %5550 = vst [vmem:[#allocation31_spill] sm:$0xff] %v4103_v50  ;;  %v958_v2 = vmul.f32 %v3961_v11, %v926_v30  ;;  %v960_v62 = vmul.f32 %v3961_v11, %v928_v33  ;;  %v4114_v60 = vmul.f32 %v4071_v61, %v4103_v50  ;;  %v931_v3 = vadd.f32 %v3952_v8, %v889_v49 }
 0x12a   : > { %vm946_vm11 = vcmp.ge.f32.partialorder %v930_v38, 0.0  ;;  %v962_v5 = vmul.f32 %v3961_v11, %v930_v38  ;;  %vm948_vm12 = vcmp.ge.f32.partialorder %v932_v39, 0.0  ;;  %v964_v35 = vmul.f32 %v3961_v11, %v932_v39 }
 0x12b   : > { %v4118_v6 = vsel %vm941_vm10, %v925_v29, %v957_v42  ;;  %vm942_vm13 = vcmp.ge.f32.partialorder %v926_v30, 0.0  ;;  %vm944_vm14 = vcmp.ge.f32.partialorder %v928_v33, 0.0  ;;  %v891_v34 = vmul.f32 %v3943_v4, %v768_v27 }
 0x12c   : > { %5551 = vst [vmem:[#allocation32_spill] sm:$0xff] %v4118_v6  ;;  %v977_v36 = vsel %vm946_vm11, %v930_v38, %v962_v5  ;;  %v979_v54 = vsel %vm948_vm12, %v932_v39, %v964_v35  ;;  %vm947_vm0 = vcmp.ge.f32.partialorder %v931_v3, 0.0  ;;  %v963_v45 = vmul.f32 %v3961_v11, %v931_v3 }
 0x12d   : > { %v933_v46 = vadd.f32 %v3955_v9, %v891_v34  ;;  %v1089_v63 = vmul.f32 %v3968_v13, %v4067_v53  ;;  %v1087_v42 = vmul.f32 %v3901_v37, %v4056_v44  ;;  %v4128_v8 = vsel %vm942_vm13, %v926_v30, %v958_v2 }
 0x12e   : > { %5552 = vst [vmem:[#allocation33_spill] sm:$0xff] %v4128_v8  ;;  %v4130_v49 = vsel %vm944_vm14, %v928_v33, %v960_v62  ;;  %v978_v39 = vsel %vm947_vm0, %v931_v3, %v963_v45  ;;  %v4135_v29 = vsel %vm991_vm8, %v977_v36, 0.0  ;;  %v4139_v9 = vsel %vm991_vm8, %v979_v54, 0.0 }
 0x12f   : > { %5553 = vst [vmem:[#allocation34_spill] sm:$0xff] %v4130_v49  ;;  %vm949_vm1 = vcmp.ge.f32.partialorder %v933_v46, 0.0  ;;  %v965_v27 = vmul.f32 %v3961_v11, %v933_v46  ;;  %1111 = vrot.lane.b32.xlu1 %v1089_v63, %s5518_s22  ;;  %1107 = vrot.lane.b32.xlu0 %v1087_v42, %s5518_s22  ;;  %v1191_v30 = vmul.f32 %v3979_v17, %v4067_v53  ;;  %vm1640_vm4 = vcmask 1045504  }
 0x130   : > { %v1189_v33 = vmul.f32 %v3905_v43, %v4056_v44  ;;  %v1094_v38 = vmul.f32 %v3968_v13, %v4103_v50  ;;  %v1088_v2 = vmul.f32 %v3959_v10, %v4060_v58  ;;  %v1090_v5 = vmul.f32 %v3972_v15, %v4087_v22 }
 0x131   : > { %v4152_v62 = vsel %vm949_vm1, %v933_v46, %v965_v27  ;;  %v1092_v63 = vmul.f32 %v3901_v37, %v4118_v6  ;;  %v1368_v35 = vmul.f32 %v3988_v20, %v4067_v53  ;;  %v4162_v3 = vmul.f32 %v3976_v16, %v4060_v58 }
 0x132   : > { %v4166_v13 = vmul.f32 %v3979_v17, %v4103_v50  ;;  %v1373_v46 = vmul.f32 %v3988_v20, %v4103_v50  ;;  %v1503_v34 = vmul.f32 %v4010_v32, %v4067_v53  ;;  %v4174_v37 = vsel %vm991_vm8, %v978_v39, 0.0 }
 0x133   : > { %5554 = vst [vmem:[#allocation35_spill] sm:$0xff] %v4174_v37  ;;  %1213 = vrot.lane.b32.xlu1 %v1191_v30, %s3365_s17  ;;  %1209 = vrot.lane.b32.xlu0 %v1189_v33, %s3365_s17  ;;  %v4180_v36 = vmul.f32 %v3998_v25, %v4087_v22  ;;  %v4184_v17 = vmul.f32 %v3905_v43, %v4118_v6  ;;  %v1402_v45 = vrot.slane %v1368_v35, 1  ;;  %vm1127_vm7 = vcmask 785408  }
 0x134   : > { %v1508_v54 = vmul.f32 %v4010_v32, %v4103_v50  ;;  %v1403_v42 = vrot.slane %v1373_v46, 1  ;;  %v4190_v39 = vmul.f32 %v3959_v10, %v4128_v8  ;;  %v4194_v27 = vmul.f32 %v4023_v41, %v4103_v50 }
 0x135   : > { %v1537_v30 = vrot.slane %v1503_v34, 1  ;;  %v4198_v43 = vmul.f32 %v3972_v15, %v4130_v49  ;;  %v4202_v59 = vmul.f32 %v4023_v41, %v4067_v53  ;;  %v4209_v10 = vmul.f32 %v3976_v16, %v4128_v8 }
 0x136   : > { %v1538_v33 = vrot.slane %v1508_v54, 1  ;;  %v4205_v35 = vsel %vm1293_vm15, %v1402_v45, %v1403_v42  ;;  %v1378_v46 = vmul.f32 %v3988_v20, %v4139_v9  ;;  %v1366_v34 = vmul.f32 %v3907_v47, %v4056_v44 }
 0x137   : > { %1121 = vrot.lane.b32.xlu1 %v1094_v38, %s5518_s22  ;;  %1109 = vrot.lane.b32.xlu0 %v1088_v2, %s5518_s22  ;;  %v1371_v45 = vmul.f32 %v3907_v47, %v4118_v6  ;;  %v1501_v16 = vmul.f32 %v3913_v52, %v4056_v44  ;;  %v1506_v53 = vmul.f32 %v3913_v52, %v4118_v6  ;;  %v1878_v38 = vrot.slane %v4091_v21, 2 }
 0x138   : > { %v4218_v15 = vsel %vm1293_vm15, %v1537_v30, %v1538_v33  ;;  %v1415_v4 = vrot.slane %v1378_v46, 1  ;;  %v1396_v20 = vrot.slane %v1366_v34, 1  ;;  %v1376_v30 = vmul.f32 %v3907_v47, %v4135_v29 }
 0x139   : > { %v1397_v2 = vrot.slane %v1371_v45, 1  ;;  %v1531_v56 = vrot.slane %v1501_v16, 1  ;;  %v1713_v54 = vmul.f32 %v3917_v57, %v4056_v44  ;;  %v1532_v34 = vrot.slane %v1506_v53, 1 }
 0x13a   : > { %v837_v50 = vpop.f32.mrb[6].mxu0  ;;  %v4234_v46 = vsel %vm1293_vm15, %v1403_v42, %v1415_v4  ;;  %v4238_v37 = vmul.f32 %v3917_v57, %v4118_v6  ;;  %v1411_v21 = vrot.slane %v1376_v30, 1  ;;  %v1714_v12 = vmul.f32 %v4020_v40, %v4060_v58 }
 0x13b   : > { %v882_v0 = vmul.f32 %v3991_v23, %v837_v50  ;;  %v3020_v51 = vpop.f32.mrb[7].mxu0  ;;  %1113 = vrot.lane.b32.xlu0 %v1090_v5, %s5518_s22  ;;  %1117 = vrot.lane.b32.xlu1 %v1092_v63, %s5518_s22  ;;  %v4243_v47 = vsel %vm1293_vm15, %v1396_v20, %v1397_v2  ;;  %v1743_v45 = vrot.slane %v1713_v54, 2  ;;  %v4249_v53 = vsel %vm1293_vm15, %v1531_v56, %v1532_v34 }
 0x13c   : > { %v1513_v51 = vmul.f32 %v4010_v32, %v4139_v9  ;;  %v1744_v4 = vrot.slane %v4238_v37, 2  ;;  %v4254_v5 = vmul.f32 %v3981_v18, %v4118_v6  ;;  %v4257_v42 = vsel %vm1293_vm15, %v1397_v2, %v1411_v21 }
 0x13d   : > { %v924_v50 = vadd.f32 %v3994_v24, %v882_v0  ;;  %v1511_v54 = vmul.f32 %v3913_v52, %v4135_v29  ;;  %v1367_v32 = vmul.f32 %v3985_v19, %v4060_v58  ;;  %v4278_v21 = vmul.f32 %v3985_v19, %v4128_v8 }
 0x13e   : > { %v842_v63 = vpop.f32.mrb[8].mxu0  ;;  %v1550_v16 = vrot.slane %v1513_v51, 1  ;;  %v4266_v20 = vsel %vm1640_vm4, %v1743_v45, %v1744_v4  ;;  %v1879_v2 = vrot.slane %v4254_v5, 2  ;;  %v1851_v5 = vmul.f32 %v4075_v31, %v4087_v22 }
 0x13f   : > { %vm940_vm5 = vcmp.ge.f32.partialorder %v924_v50, 0.0  ;;  %v956_v56 = vmul.f32 %v3961_v11, %v924_v50  ;;  %v887_v0 = vmul.f32 %v3991_v23, %v842_v63  ;;  %v3023_v37 = vpop.f32.mrb[9].mxu0  ;;  %1211 = vrot.lane.b32.xlu0 %v4162_v3, %s3365_s17  ;;  %1223 = vrot.lane.b32.xlu1 %v4166_v13, %s3365_s17  ;;  %v1546_v30 = vrot.slane %v1511_v54, 1 }
 0x140   : > { %v4273_v52 = vsel %vm1293_vm15, %v1538_v33, %v1550_v16  ;;  %v1399_v63 = vrot.slane %v1367_v32, 1  ;;  %v1725_v3 = vmul.f32 %v4023_v41, %v4139_v9  ;;  %v4290_v16 = vsel %vm1640_vm4, %v1878_v38, %v1879_v2 }
 0x141   : > { %v971_v51 = vsel %vm940_vm5, %v924_v50, %v956_v56  ;;  %v929_v45 = vadd.f32 %v3994_v24, %v887_v0  ;;  %v4293_v54 = vsel %vm1293_vm15, %v1532_v34, %v1546_v30  ;;  %v5509_v50 = vrot.slane %v4278_v21, 1 }
 0x142   : > { %v4285_v13 = vsel %vm986_vm3, %v971_v51, 0.0  ;;  %v847_v33 = vpop.f32.mrb[10].mxu0  ;;  %v1762_v56 = vrot.slane %v1725_v3, 2  ;;  %v4301_v0 = vsel %vm991_vm8, %v4152_v62, 0.0  ;;  %v4316_v34 = vmul.f32 %v4002_v26, %v4130_v49 }
 0x143   : > { %vm945_vm6 = vcmp.ge.f32.partialorder %v929_v45, 0.0  ;;  %v961_v32 = vmul.f32 %v3961_v11, %v929_v45  ;;  %v892_v41 = vmul.f32 %v3991_v23, %v847_v33  ;;  %v3026_v14 = vpop.f32.mrb[11].mxu0  ;;  %1215 = vrot.lane.b32.xlu0 %v4180_v36, %s3365_s17  ;;  %1219 = vrot.lane.b32.xlu1 %v4184_v17, %s3365_s17  ;;  %v4310_v38 = vsel %vm1293_vm15, %v1399_v63, %v5509_v50 }
 0x144   : > { %v1369_v23 = vmul.f32 %v4002_v26, %v4087_v22  ;;  %v5555_v36 = vrot.slane %v4194_v27, 2  ;;  %v1723_v30 = vmul.f32 %v3917_v57, %v4135_v29  ;;  %v5508_v63 = vrot.slane %v4316_v34, 1 }
 0x145   : > { %v4318_v62 = vsel %vm945_vm6, %v929_v45, %v961_v32  ;;  %v934_v37 = vadd.f32 %v3994_v24, %v892_v41  ;;  %v1502_v3 = vmul.f32 %v4006_v28, %v4060_v58  ;;  %v4333_v45 = vmul.f32 %v4006_v28, %v4128_v8 }
 0x146   : > { %v4324_v17 = vsel %vm1640_vm4, %v5555_v36, %v1762_v56  ;;  %v1405_v51 = vrot.slane %v1369_v23, 1  ;;  %v1758_v33 = vrot.slane %v1723_v30, 2  ;;  %v1860_v32 = vmul.f32 %v4071_v61, %v4139_v9 }
 0x147   : > { %vm950_vm3 = vcmp.ge.f32.partialorder %v934_v37, 0.0  ;;  %v966_v24 = vmul.f32 %v3961_v11, %v934_v37  ;;  %1425 = vrot.lane.b32.xlu1 %v4205_v35, %s5518_s22  ;;  %1119 = vrot.lane.b32.xlu0 %v4190_v39, %s5518_s22  ;;  %v1534_v41 = vrot.slane %v1502_v3, 1  ;;  %v5506_v56 = vrot.slane %v4333_v45, 1 }
 0x148   : > { %v4345_v57 = vsel %vm1293_vm15, %v1405_v51, %v5508_v63  ;;  %v1504_v11 = vmul.f32 %v4014_v55, %v4087_v22  ;;  %v4351_v61 = vsel %vm1640_vm4, %v1744_v4, %v1758_v33  ;;  %v1897_v23 = vrot.slane %v1860_v32, 2 }
 0x149   : > { %v981_v14 = vsel %vm950_vm3, %v934_v37, %v966_v24  ;;  %v4355_v35 = vmul.f32 %v4014_v55, %v4130_v49  ;;  %v4364_v36 = vsel %vm1293_vm15, %v1534_v41, %v5506_v56  ;;  %v1858_v37 = vmul.f32 %v3981_v18, %v4135_v29 }
 0x14a   : > { %v4359_v39 = vsel %vm991_vm8, %v981_v14, 0.0  ;;  %v1540_v30 = vrot.slane %v1504_v11, 1  ;;  %v5556_v4 = vrot.slane %v4114_v60, 2  ;;  %v4378_v24 = vmul.f32 %v4020_v40, %v4128_v8 }
 0x14b   : > { %v5505_v3 = vrot.slane %v4355_v35, 1  ;;  %1560 = vrot.lane.b32.xlu1 %v4218_v15, %s3365_s17  ;;  %1123 = vrot.lane.b32.xlu0 %v4198_v43, %s5518_s22  ;;  %v1749_v18 = vrot.slane %v4202_v59, 2  ;;  %v1893_v33 = vrot.slane %v1858_v37, 2  ;;  %v1716_v32 = vmul.f32 %v4029_v48, %v4087_v22 }
 0x14c   : > { %v4371_v51 = vsel %vm1640_vm4, %v5556_v4, %v1897_v23  ;;  %v4389_v41 = vmul.f32 %v4029_v48, %v4130_v49  ;;  %v5557_v11 = vmov %v5556_v4  ;;  %v5558_v14 = vrot.slane %v4107_v1, 2 }
 0x14d   : > { %v4399_v43 = vsel %vm1293_vm15, %v1540_v30, %v5505_v3  ;;  %v1746_v59 = vrot.slane %v1714_v12, 2  ;;  %v5504_v15 = vrot.slane %v4378_v24, 2  ;;  %v4405_v37 = vsel %vm1640_vm4, %v1879_v2, %v1893_v33 }
 0x14e   : > { %v1886_v23 = vsel %vm1640_vm4, %v5558_v14, %v5557_v11  ;;  %v1752_v4 = vrot.slane %v1716_v32, 2  ;;  %v5507_v60 = vrot.slane %v4389_v41, 2  ;;  %v4410_v1 = vmul.f32 %v4045_v7, %v4128_v8  ;;  %v5560_v32 = vld [vmem:[#allocation35_spill] sm:$0xff] }
 0x14f   : > { %v5559_v11 = vrot.slane %v4194_v27, 2  ;;  %v4418_v12 = vsel %vm1640_vm4, %v1746_v59, %v5504_v15  ;;  %v4424_v2 = vmul.f32 %v4075_v31, %v4130_v49  ;;  %1221 = vrot.lane.b32.xlu0 %v4209_v10, %s3365_s17  ;;  %v1197_v27 = vmul.f32 %v3998_v25, %v4130_v49  ;;  %v5562_v25 = vld [vmem:[#allocation29_spill] sm:$0xff] }
 0x150   : > { %v1882_v33 = vrot.slane %v4410_v1, 2  ;;  %v1377_v14 = vmul.f32 %v3985_v19, %v5560_v32  ;;  %v1887_v59 = vrot.slane %v1851_v5, 2  ;;  %v5563_v3 = vrot.slane %v5562_v25, 2  ;;  %v5565_v19 = vld [vmem:[#allocation19_spill] sm:$0xff] }
 0x151   : > { %v1751_v30 = vsel %vm1640_vm4, %v1749_v18, %v5559_v11  ;;  %v4434_v18 = vsel %vm1640_vm4, %v1752_v4, %v5507_v60  ;;  %v5510_v11 = vrot.slane %v4424_v2, 2  ;;  %v1379_v1 = vmul.f32 %v4002_v26, %v4301_v0 }
 0x152   : > { %1772 = vrot.lane.b32.xlu1 %v1751_v30, %s5518_s22  ;;  %v5561_v30 = vld [vmem:[#allocation18_spill] sm:$0xff]  ;;  %v4447_v56 = vsel %vm1640_vm4, %v5563_v3, %v1882_v33  ;;  %v1413_v4 = vrot.slane %v1377_v14, 1  ;;  %v1505_v5 = vmul.f32 %v5565_v19, %v4285_v13  ;;  %v1510_v25 = vmul.f32 %v5565_v19, %v4318_v62 }
 0x153   : > { %v1370_v15 = vmul.f32 %v5561_v30, %v4285_v13  ;;  %v1375_v10 = vmul.f32 %v5561_v30, %v4318_v62  ;;  %5564 = vst [vmem:[#allocation35_spill] sm:$0xff] %v4447_v56  ;;  %v4456_v60 = vsel %vm1640_vm4, %v1887_v59, %v5510_v11  ;;  %1225 = vrot.lane.b32.xlu0 %v1197_v27, %s3365_s17  ;;  %v5567_v3 = vrot.slane %v4278_v21, 1  ;;  %v5569_v11 = vld [vmem:[#allocation22_spill] sm:$0xff] }
 0x154   : > { %5566 = vst [vmem:[#allocation18_spill] sm:$0xff] %v4456_v60  ;;  %v1417_v14 = vrot.slane %v1379_v1, 1  ;;  %v1543_v56 = vrot.slane %v1505_v5, 1  ;;  %v1512_v59 = vmul.f32 %v4006_v28, %v5560_v32  ;;  %v1717_v60 = vmul.f32 %v5569_v11, %v4285_v13  ;;  %v5571_v28 = vld [vmem:[#allocation24_spill] sm:$0xff] }
 0x155   : > { %v1408_v63 = vrot.slane %v1370_v15, 1  ;;  %v1409_v50 = vrot.slane %v1375_v10, 1  ;;  %v4465_v26 = vsel %vm1293_vm15, %v5567_v3, %v1413_v4  ;;  %v1544_v10 = vrot.slane %v1510_v25, 1 }
 0x156   : > { %1907 = vrot.lane.b32.xlu1 %v1886_v23, %s3365_s17  ;;  %v1722_v23 = vmul.f32 %v5569_v11, %v4318_v62  ;;  %v5570_v21 = vrot.slane %v4316_v34, 1  ;;  %v1548_v4 = vrot.slane %v1512_v59, 1  ;;  %v1514_v1 = vmul.f32 %v4014_v55, %v4301_v0 }
 0x157   : > { %v4470_v15 = vsel %vm1293_vm15, %v1408_v63, %v1409_v50  ;;  %v1852_v63 = vmul.f32 %v5571_v28, %v4285_v13  ;;  %v4486_v5 = vsel %vm1293_vm15, %v1543_v56, %v1544_v10  ;;  %v1755_v25 = vrot.slane %v1717_v60, 2  ;;  %1421 = vrot.lane.b32.xlu0 %v4243_v47, %s5518_s22 }
 0x158   : > { %5568 = vst [vmem:[#allocation29_spill] sm:$0xff] %v4470_v15  ;;  %v4479_v27 = vsel %vm1293_vm15, %v5570_v21, %v1417_v14  ;;  %v1756_v3 = vrot.slane %v1722_v23, 2  ;;  %v1857_v15 = vmul.f32 %v5571_v28, %v4318_v62  ;;  %v5572_v34 = vrot.slane %v4333_v45, 1 }
 0x159   : > { %v1552_v14 = vrot.slane %v1514_v1, 1  ;;  %v1890_v59 = vrot.slane %v1852_v63, 2  ;;  %v1724_v56 = vmul.f32 %v4020_v40, %v5560_v32  ;;  %v1726_v47 = vmul.f32 %v4029_v48, %v4301_v0 }
 0x15a   : > { %1435 = vrot.lane.b32.xlu1 %v4234_v46, %s5518_s22  ;;  %v4497_v55 = vsel %vm1293_vm15, %v5572_v34, %v1548_v4  ;;  %v4502_v60 = vsel %vm1640_vm4, %v1755_v25, %v1756_v3  ;;  %v1891_v23 = vrot.slane %v1857_v15, 2  ;;  %v1380_v46 = vmul.f32 %v5561_v30, %v4359_v39 }
 0x15b   : > { %v5573_v45 = vrot.slane %v4355_v35, 1  ;;  %v1760_v4 = vrot.slane %v1724_v56, 2  ;;  %v1515_v1 = vmul.f32 %v5565_v19, %v4359_v39  ;;  %v1859_v40 = vmul.f32 %v4045_v7, %v5560_v32  ;;  %1556 = vrot.lane.b32.xlu0 %v4249_v53, %s3365_s17 }
 0x15c   : > { %v4518_v15 = vsel %vm1640_vm4, %v1890_v59, %v1891_v23  ;;  %v1419_v63 = vrot.slane %v1380_v46, 1  ;;  %v1764_v30 = vrot.slane %v1726_v47, 2  ;;  %v1727_v48 = vmul.f32 %v5569_v11, %v4359_v39  ;;  %v5576_v47 = vld [vmem:[#allocation27_spill] sm:$0xff] }
 0x15d   : > { %v4511_v21 = vsel %vm1293_vm15, %v5573_v45, %v1552_v14  ;;  %v5574_v35 = vrot.slane %v4378_v24, 2  ;;  %v1554_v7 = vrot.slane %v1515_v1, 1  ;;  %v1895_v25 = vrot.slane %v1859_v40, 2  ;;  %v5581_v40 = vld [vmem:[#allocation25_spill] sm:$0xff] }
 0x15e   : > { %1431 = vrot.lane.b32.xlu1 %v4257_v42, %s5518_s22  ;;  %v1861_v34 = vmul.f32 %v4075_v31, %v4301_v0  ;;  %v4534_v14 = vsel %vm1293_vm15, %v1409_v50, %v1419_v63  ;;  %v5575_v11 = vrot.slane %v4389_v41, 2  ;;  %v1766_v59 = vrot.slane %v1727_v48, 2  ;;  %v5577_v41 = vld [vmem:[#allocation12_spill] sm:$0xff]  ;;  %v5583_v48 = vld [vmem:[#allocation13_spill] sm:$0xff] }
 0x15f   : > { %v4529_v19 = vsel %vm1640_vm4, %v5574_v35, %v1760_v4  ;;  %v1862_v42 = vmul.f32 %v5571_v28, %v4359_v39  ;;  %v4544_v24 = vsel %vm1293_vm15, %v1544_v10, %v1554_v7  ;;  %v4547_v56 = vsel %vm1640_vm4, %v1882_v33, %v1895_v25  ;;  %v5578_v4 = vld [vmem:[#allocation14_spill] sm:$0xff]  ;;  %1768 = vrot.lane.b32.xlu0 %v4266_v20, %s5518_s22  ;;  %v5580_v28 = vld [vmem:[#allocation23_spill] sm:$0xff] }
 0x160   : > { %v4539_v53 = vsel %vm1640_vm4, %v5575_v11, %v1764_v30  ;;  %v1899_v46 = vrot.slane %v1861_v34, 2  ;;  %v4550_v31 = vsel %vm1640_vm4, %v1756_v3, %v1766_v59  ;;  %v1603_v45 = vrot.slane %v5577_v41, %v5576_v47  ;;  %v5582_v30 = vld [vmem:[#allocation21_spill] sm:$0xff]  ;;  %v5584_v35 = vld [vmem:[#allocation31_spill] sm:$0xff] }
 0x161   : > { %v1901_v50 = vrot.slane %v1862_v42, 2  ;;  %v1607_v1 = vrot.slane %v5578_v4, %v5576_v47  ;;  %v5579_v39 = vrot.slane %v4424_v2, 2  ;;  %v1269_v3 = vmul.f32 %v5580_v28, %v4056_v44  ;;  %v4597_v4 = vld [vmem:[%s5453_s5 + $0x18] sm:$0xff] }
 0x162   : > { %1570 = vrot.lane.b32.xlu1 %v4273_v52, %s3365_s17  ;;  %v1270_v63 = vmul.f32 %v5581_v40, %v4060_v58  ;;  %v4574_v20 = vrot.slane %v5583_v48, %v5582_v30  ;;  %v1273_v52 = vmul.f32 %v5580_v28, %v4118_v6  ;;  %v1274_v2 = vmul.f32 %v5581_v40, %v4128_v8 }
 0x163   : > { %v4563_v33 = vsel %vm1640_vm4, %v5579_v39, %v1899_v46  ;;  %v4566_v10 = vsel %vm1640_vm4, %v1891_v23, %v1901_v50  ;;  %v1616_v7 = vmul.f32 %v1603_v45, %v4056_v44  ;;  %v1617_v25 = vmul.f32 %v1607_v1, %v4060_v58  ;;  %1903 = vrot.lane.b32.xlu0 %v4290_v16, %s3365_s17 }
 0x164   : > { %v4582_v23 = vmul.f32 %v4574_v20, %v5584_v35  ;;  %v1611_v34 = vrot.slane %v5583_v48, %v5576_v47  ;;  %v1294_v11 = vrot.slane %v1269_v3, 1  ;;  %v1295_v59 = vrot.slane %v1273_v52, 1  ;;  %5585 = vst [vmem:[#allocation19_spill] sm:$0xff] %v4597_v4 }
 0x165   : > { %v1297_v42 = vrot.slane %v1270_v63, 1  ;;  %v1298_v46 = vrot.slane %v1274_v2, 1  ;;  %v1620_v50 = vmul.f32 %v1603_v45, %v4118_v6  ;;  %v1621_v41 = vmul.f32 %v1607_v1, %v4128_v8  ;;  %v5586_v8 = vld [vmem:[#allocation28_spill] sm:$0xff] }
 0x166   : > { %1566 = vrot.lane.b32.xlu1 %v4293_v54, %s3365_s17  ;;  %v1268_v39 = vrot.slane %v4597_v4, %v5582_v30  ;;  %v1615_v16 = vrot.slane %v4597_v4, %v5576_v47  ;;  %v4604_v54 = vsel %vm1293_vm15, %v1294_v11, %v1295_v59  ;;  %v1641_v63 = vrot.slane %v1616_v7, 2 }
 0x167   : > { %v4607_v3 = vsel %vm1293_vm15, %v1297_v42, %v1298_v46  ;;  %v1644_v48 = vrot.slane %v1617_v25, 2  ;;  %v1642_v52 = vrot.slane %v1620_v50, 2  ;;  %v1645_v2 = vrot.slane %v1621_v41, 2  ;;  %1423 = vrot.lane.b32.xlu0 %v4310_v38, %s5518_s22 }
 0x168   : > { %v1618_v6 = vmul.f32 %v1611_v34, %v5586_v8  ;;  %v1622_v58 = vmul.f32 %v1611_v34, %v5584_v35  ;;  %v1277_v11 = vmul.f32 %v5580_v28, %v4135_v29  ;;  %v1278_v7 = vmul.f32 %v5581_v40, %v5560_v32 }
 0x169   : > { %v4621_v25 = vsel %vm1640_vm4, %v1641_v63, %v1642_v52  ;;  %v4624_v42 = vsel %vm1640_vm4, %v1644_v48, %v1645_v2  ;;  %v1276_v47 = vmul.f32 %v1268_v39, %v4130_v49  ;;  %v1279_v28 = vmul.f32 %v4574_v20, %v4139_v9 }
 0x16a   : > { %1782 = vrot.lane.b32.xlu1 %v4324_v17, %s5518_s22  ;;  %v1647_v50 = vrot.slane %v1618_v6, 2  ;;  %v1648_v41 = vrot.slane %v1622_v58, 2  ;;  %v1306_v38 = vrot.slane %v1277_v11, 1  ;;  %v1308_v30 = vrot.slane %v1278_v7, 1 }
 0x16b   : > { %v1272_v17 = vmul.f32 %v1268_v39, %v4087_v22  ;;  %v1619_v40 = vmul.f32 %v1615_v16, %v4087_v22  ;;  %v1623_v63 = vmul.f32 %v1615_v16, %v4130_v49  ;;  %1427 = vrot.lane.b32.xlu0 %v4345_v57, %s5518_s22  ;;  %v1304_v11 = vrot.slane %v1276_v47, 1 }
 0x16c   : > { %v4629_v4 = vsel %vm1640_vm4, %v1647_v50, %v1648_v41  ;;  %v4640_v58 = vsel %vm1293_vm15, %v1295_v59, %v1306_v38  ;;  %v4643_v6 = vsel %vm1293_vm15, %v1298_v46, %v1308_v30  ;;  %v1310_v7 = vrot.slane %v1279_v28, 1  ;;  %v2080_v28 = vld [vmem:[%s5457_s9 + $0x98] sm:$0xff] }
 0x16d   : > { %5587 = vst [vmem:[#allocation22_spill] sm:$0xff] %v4629_v4  ;;  %v1303_v48 = vrot.slane %v1272_v17, 1  ;;  %v1650_v50 = vrot.slane %v1619_v40, 2  ;;  %v1651_v4 = vrot.slane %v1623_v63, 2  ;;  %v1624_v22 = vmul.f32 %v1603_v45, %v4135_v29  ;;  %v2079_v17 = vld [vmem:[%s5457_s9 + $0x90] sm:$0xff]  ;;  %v2109_v63 = vld [vmem:[%s5457_s9 + $0x180] sm:$0xff] }
 0x16e   : > { %1778 = vrot.lane.b32.xlu1 %v4351_v61, %s5518_s22  ;;  %v1625_v57 = vmul.f32 %v1607_v1, %v5560_v32  ;;  %v1280_v61 = vmul.f32 %v1268_v39, %v4301_v0  ;;  %v1626_v59 = vmul.f32 %v1611_v34, %v4139_v9  ;;  %v5588_v38 = vrot.slane %v4582_v23, 1  ;;  %v5589_v39 = vld [vmem:[#allocation16_spill] sm:$0xff] }
 0x16f   : > { %v4647_v49 = vsel %vm1293_vm15, %v1303_v48, %v1304_v11  ;;  %v4658_v46 = vsel %vm1640_vm4, %v1650_v50, %v1651_v4  ;;  %v1653_v47 = vrot.slane %v1624_v22, 2  ;;  %v1627_v29 = vmul.f32 %v1615_v16, %v4301_v0  ;;  %1558 = vrot.lane.b32.xlu0 %v4364_v36, %s3365_s17  ;;  %v2094_v50 = vld [vmem:[%s5457_s9 + $0x108] sm:$0xff] }
 0x170   : > { %v4655_v30 = vsel %vm1293_vm15, %v5588_v38, %v1310_v7  ;;  %v1655_v9 = vrot.slane %v1625_v57, 2  ;;  %v1312_v45 = vrot.slane %v1280_v61, 1  ;;  %v1657_v1 = vrot.slane %v1626_v59, 2  ;;  %v2093_v7 = vld [vmem:[%s5457_s9 + $0x100] sm:$0xff]  ;;  %v2066_v59 = vld [vmem:[%s5457_s9 + $0x28] sm:$0xff] }
 0x171   : > { %v4666_v32 = vsel %vm1640_vm4, %v1642_v52, %v1653_v47  ;;  %v1659_v34 = vrot.slane %v1627_v29, 2  ;;  %v1091_v16 = vmul.f32 %v5589_v39, %v4285_v13  ;;  %v5591_v52 = vld [vmem:[#allocation35_spill] sm:$0xff]  ;;  %v3119_v40 = vpack.c.bf16 %v2080_v28, %v2079_v17  ;;  %v2095_v29 = vld [vmem:[%s5457_s9 + $0x110] sm:$0xff] }
 0x172   : > { %1917 = vrot.lane.b32.xlu1 %v4371_v51, %s3365_s17  ;;  %v4673_v22 = vsel %vm1640_vm4, %v1645_v2, %v1655_v9  ;;  %v4676_v0 = vsel %vm1293_vm15, %v1304_v11, %v1312_v45  ;;  %v4679_v36 = vsel %vm1640_vm4, %v1648_v41, %v1657_v1  ;;  %v5592_v2 = vld [vmem:[#allocation18_spill] sm:$0xff]  ;;  %v3149_v61 = vpack.c.bf16 %v2094_v50, %v2093_v7  ;;  %v3292_v1 = vld [vmem:[%s5453_s5] sm:$0xff] }
 0x173   : > { %1562 = vrot.lane.b32.xlu0 %v4399_v43, %s3365_s17  ;;  %v4682_v51 = vsel %vm1640_vm4, %v1651_v4, %v1659_v34  ;;  %v5590_v43 = vld [vmem:[#allocation17_spill] sm:$0xff]  ;;  %v1096_v4 = vmul.f32 %v5589_v39, %v4318_v62  ;;  %v2064_v11 = vld [vmem:[%s5457_s9 + $0x18] sm:$0xff]  ;;  %v5595_v34 = vld [vmem:[#allocation20_spill] sm:$0xff]  ;;  %vm2293_vm0 = vcmask 64512  }
 0x174   : > { %v2096_v9 = vld [vmem:[%s5457_s9 + $0x118] sm:$0xff]  ;;  %v4802_v39 = vrot.slane %v3292_v1, %v5595_v34 }
 0x175   : > { %v3153_v45 = vpack.c.bf16 %v2096_v9, %v2095_v29  ;;  %v2117_v29 = vld [vmem:[%s5457_s9 + $0x1c0] sm:$0xff]  ;;  %v2118_v9 = vld [vmem:[%s5457_s9 + $0x1c8] sm:$0xff] }
 0x176   : > { %1913 = vrot.lane.b32.xlu1 %v4405_v37, %s3365_s17  ;;  %v1193_v37 = vmul.f32 %v5590_v43, %v4285_v13  ;;  %v5593_v13 = vld [vmem:[#allocation29_spill] sm:$0xff]  ;;  %v1034_v17 = vmul.f32 %v4802_v39, %v4056_v44 }
 0x177   : > { %1770 = vrot.lane.b32.xlu0 %v4418_v12, %s5518_s22  ;;  %v1198_v12 = vmul.f32 %v5590_v43, %v4318_v62  ;;  %v2077_v62 = vld [vmem:[%s5457_s9 + $0x80] sm:$0xff] }
 0x17a   : > { %1115 = vrot.lane.b32.xlu1 %v1091_v16, %s5518_s22 }
 0x17b   : > { %1774 = vrot.lane.b32.xlu0 %v4434_v18, %s5518_s22  ;;  %v2078_v18 = vld [vmem:[%s5457_s9 + $0x88] sm:$0xff] }
 0x17c   : > { %v3115_v41 = vpack.c.bf16 %v2078_v18, %v2077_v62  ;;  %v2068_v62 = vld [vmem:[%s5457_s9 + $0x38] sm:$0xff] }
 0x17e   : > { %1217 = vrot.lane.b32.xlu1 %v1193_v37, %s3365_s17  ;;  %3116 = vmatprep.subr.bf16.mxu1 %v3115_v41  ;;  %v2083_v37 = vld [vmem:[%s5457_s9 + $0xb0] sm:$0xff]  ;;  %v2097_v41 = vld [vmem:[%s5457_s9 + $0x120] sm:$0xff] }
 0x17f   : > { %1905 = vrot.lane.b32.xlu0 %v5591_v52, %s3365_s17  ;;  %v2113_v52 = vld [vmem:[%s5457_s9 + $0x1a0] sm:$0xff] }
 0x182   : > { %1125 = vrot.lane.b32.xlu1 %v1096_v4, %s5518_s22  ;;  %v2084_v4 = vld [vmem:[%s5457_s9 + $0xb8] sm:$0xff] }
 0x183   : > { %1909 = vrot.lane.b32.xlu0 %v5592_v2, %s3365_s17  ;;  %v2114_v2 = vld [vmem:[%s5457_s9 + $0x1a8] sm:$0xff] }
 0x184   : > { %v3155_v18 = vpack.c.bf16 %v2114_v2, %v2113_v52  ;;  %v2102_v52 = vld [vmem:[%s5457_s9 + $0x148] sm:$0xff] }
 0x186   : > { %1227 = vrot.lane.b32.xlu1 %v1198_v12, %s3365_s17  ;;  %v3127_v12 = vpack.c.bf16 %v2084_v4, %v2083_v37  ;;  %v2072_v37 = vld [vmem:[%s5457_s9 + $0x58] sm:$0xff]  ;;  %v2101_v4 = vld [vmem:[%s5457_s9 + $0x140] sm:$0xff] }
 0x187   : > { %1433 = vrot.lane.b32.xlu0 %v4465_v26, %s5518_s22  ;;  %v2061_v26 = vld [vmem:[%s5457_s9] sm:$0xff] }
 0x18a   : > { %1429 = vrot.lane.b32.xlu1 %v5593_v13, %s5518_s22  ;;  %v2067_v13 = vld [vmem:[%s5457_s9 + $0x30] sm:$0xff] }
 0x18b   : > { %1437 = vrot.lane.b32.xlu0 %v4479_v27, %s5518_s22  ;;  %v2062_v27 = vld [vmem:[%s5457_s9 + $0x8] sm:$0xff] }
 0x18e   : > { %1564 = vrot.lane.b32.xlu1 %v4486_v5, %s3365_s17  ;;  %v3117_v5 = vpack.c.bf16 %v2062_v27, %v2061_v26  ;;  %v3129_v26 = vpack.c.bf16 %v2068_v62, %v2067_v13  ;;  %v2098_v27 = vld [vmem:[%s5457_s9 + $0x128] sm:$0xff]  ;;  %v2089_v62 = vld [vmem:[%s5457_s9 + $0xe0] sm:$0xff] }
 0x18f   : > { %1568 = vrot.lane.b32.xlu0 %v4497_v55, %s3365_s17  ;;  %v2110_v55 = vld [vmem:[%s5457_s9 + $0x188] sm:$0xff]  ;;  %v3157_v28 = vpack.c.bf16 %v2098_v27, %v2097_v41  ;;  %v3165_v27 = vpack.c.bf16 %v2102_v52, %v2101_v4 }
 0x190   : > { %3118 = vmatpush3.bf16.msra.mxu1 %v3117_v5  ;;  %v3147_v48 = vpack.c.bf16 %v2110_v55, %v2109_v63  ;;  %v2085_v5 = vld [vmem:[%s5457_s9 + $0xc0] sm:$0xff]  ;;  %v2115_v63 = vld [vmem:[%s5457_s9 + $0x1b0] sm:$0xff]  ;;  %v2116_v55 = vld [vmem:[%s5457_s9 + $0x1b8] sm:$0xff] }
 0x191   : > { %3120 = vmatprep.subr.bf16.mxu1 %v3119_v40  ;;  %v2086_v40 = vld [vmem:[%s5457_s9 + $0xc8] sm:$0xff]  ;;  %v3159_v50 = vpack.c.bf16 %v2116_v55, %v2115_v63 }
 0x192   : > { %1776 = vrot.lane.b32.xlu1 %v4502_v60, %s5518_s22  ;;  %v2063_v60 = vld [vmem:[%s5457_s9 + $0x10] sm:$0xff]  ;;  %3148 = vmatprep.subr.bf16.mxu0 %v3147_v48  ;;  %s5594_s22 = smov 96   ;;  %v3131_v7 = vpack.c.bf16 %v2086_v40, %v2085_v5  ;;  %v2074_v40 = vld [vmem:[%s5457_s9 + $0x68] sm:$0xff] }
 0x193   : > { %v3121_v57 = vpack.c.bf16 %v2064_v11, %v2063_v60  ;;  %1572 = vrot.lane.b32.xlu0 %v4511_v21, %s3365_s17  ;;  %3150 = vmatpush3.bf16.msra.mxu0 %v3149_v61  ;;  %v2081_v21 = vld [vmem:[%s5457_s9 + $0xa0] sm:$0xff]  ;;  %v5596_v11 = vld [vmem:[#allocation26_spill] sm:$0xff]  ;;  %v2070_v61 = vld [vmem:[%s5457_s9 + $0x48] sm:$0xff] }
 0x195   : > { %3122 = vmatpush3.bf16.msra.mxu1 %v3121_v57  ;;  %v2069_v57 = vld [vmem:[%s5457_s9 + $0x40] sm:$0xff] }
 0x196   : > { %1911 = vrot.lane.b32.xlu1 %v4518_v15, %s3365_s17  ;;  %v2082_v15 = vld [vmem:[%s5457_s9 + $0xa8] sm:$0xff] }
 0x197   : > { %1780 = vrot.lane.b32.xlu0 %v4529_v19, %s5594_s22  ;;  %v2111_v19 = vld [vmem:[%s5457_s9 + $0x190] sm:$0xff] }
 0x19a   : > { %1439 = vrot.lane.b32.xlu1 %v4534_v14, %s5594_s22 }
 0x19b   : > { %1784 = vrot.lane.b32.xlu0 %v4539_v53, %s5594_s22 }
 0x19e   : > { %1574 = vrot.lane.b32.xlu1 %v4544_v24, %s3365_s17  ;;  %v3123_v24 = vpack.c.bf16 %v2082_v15, %v2081_v21  ;;  %v2099_v21 = vld [vmem:[%s5457_s9 + $0x130] sm:$0xff] }
 0x19f   : > { %1915 = vrot.lane.b32.xlu0 %v4547_v56, %s3365_s17  ;;  %v2112_v56 = vld [vmem:[%s5457_s9 + $0x198] sm:$0xff] }
 0x1a0   : > { %v3151_v38 = vpack.c.bf16 %v2112_v56, %v2111_v19  ;;  %3124 = vmatprep.subr.bf16.mxu1 %v3123_v24  ;;  %v3133_v24 = vpack.c.bf16 %v2070_v61, %v2069_v57  ;;  %v2100_v56 = vld [vmem:[%s5457_s9 + $0x138] sm:$0xff]  ;;  %v2122_v57 = vld [vmem:[%s5457_s9 + $0x1e8] sm:$0xff] }
 0x1a1   : > { %v4777_v14 = vpop.permute.xlu1 %1111  ;;  %v1108_v53 = vpop.permute.xlu0 %1107 }
 0x1a2   : > { %1786 = vrot.lane.b32.xlu1 %v4550_v31, %s5594_s22  ;;  %v2065_v31 = vld [vmem:[%s5457_s9 + $0x20] sm:$0xff]  ;;  %3152 = vmatprep.subr.bf16.mxu0 %v3151_v38 }
 0x1a3   : > { %v3125_v47 = vpack.c.bf16 %v2066_v59, %v2065_v31  ;;  %1919 = vrot.lane.b32.xlu0 %v4563_v33, %s3365_s17  ;;  %v3293_v33 = vld [vmem:[%s5453_s5 + $0x8] sm:$0xff]  ;;  %3154 = vmatpush3.bf16.msra.mxu0 %v3153_v45  ;;  %v2087_v31 = vld [vmem:[%s5457_s9 + $0xd0] sm:$0xff]  ;;  %v2088_v59 = vld [vmem:[%s5457_s9 + $0xd8] sm:$0xff] }
 0x1a4   : > { %3156 = vmatprep.subr.bf16.mxu0 %v3155_v18  ;;  %v2071_v45 = vld [vmem:[%s5457_s9 + $0x50] sm:$0xff]  ;;  %v3135_v1 = vpack.c.bf16 %v2088_v59, %v2087_v31  ;;  %v2090_v18 = vld [vmem:[%s5457_s9 + $0xe8] sm:$0xff] }
 0x1a5   : > { %v4804_v16 = vpop.permute.xlu1 %1213  ;;  %v4806_v43 = vpop.permute.xlu0 %1209  ;;  %3126 = vmatpush3.bf16.msra.mxu1 %v3125_v47  ;;  %v3137_v13 = vpack.c.bf16 %v2072_v37, %v2071_v45  ;;  %v3139_v5 = vpack.c.bf16 %v2090_v18, %v2089_v62  ;;  %v2123_v37 = vld [vmem:[%s5457_s9 + $0x1f0] sm:$0xff] }
 0x1a6   : > { %1921 = vrot.lane.b32.xlu1 %v4566_v10, %s3365_s17  ;;  %v4812_v10 = vrot.slane %v3293_v33, %v5595_v34  ;;  %3128 = vmatprep.subr.bf16.mxu1 %v3127_v12  ;;  %v3163_v33 = vpack.c.bf16 %v2118_v9, %v2117_v29  ;;  %s514_s17 = sand.u32 1, %s3352_s26  }
 0x1a7   : > { %3158 = vmatpush3.bf16.msra.mxu0 %v3157_v28  ;;  %v2073_v28 = vld [vmem:[%s5457_s9 + $0x60] sm:$0xff]  ;;  %s2805_s27 = sshll.u32 %s514_s17, 4  ;;  %s5407_s22 = scalar_lea.sflag [#allocation5], %s514_s17 }
 0x1a8   : > { %v1035_v44 = vmul.f32 %v4812_v10, %v5596_v11  ;;  %3160 = vmatprep.subr.bf16.mxu0 %v3159_v50  ;;  %v2104_v11 = vld [vmem:[%s5457_s9 + $0x158] sm:$0xff]  ;;  %v2121_v50 = vld [vmem:[%s5457_s9 + $0x1e0] sm:$0xff]  ;;  %s516_s29 = scalar_lea.vmem [#allocation4], %s2805_s27 }
 0x1a9   : > { %v4852_v60 = vpop.permute.xlu1 %1121  ;;  %v1110_v48 = vpop.permute.xlu0 %1109  ;;  %3130 = vmatpush3.bf16.msra.mxu1 %v3129_v26  ;;  %v2119_v26 = vld [vmem:[%s5457_s9 + $0x1d0] sm:$0xff]  ;;  %s2739_s1 = sshll.u32 %s516_s29, 4  ;;  %s5405_s1 = int_to_ptr.vmem [resolvable:$true] %s2739_s1 }
 0x1aa   : > { %v1128_v15 = vsel %vm1127_vm7, %v1108_v53, %v1110_v48  ;;  %v1129_v19 = vsel %vm1127_vm7, %v1110_v48, %v4777_v14  ;;  %3132 = vmatprep.subr.bf16.mxu1 %v3131_v7  ;;  %v3161_v53 = vpack.c.bf16 %v2100_v56, %v2099_v21  ;;  %v2103_v48 = vld [vmem:[%s5457_s9 + $0x150] sm:$0xff]  ;;  %v2092_v7 = vld [vmem:[%s5457_s9 + $0xf8] sm:$0xff]  ;;  %p3305_p0 = scmp.lt.s32.totalorder %s5405_s1, %s3303_s21 }
 0x1ab   : > { %v1144_v38 = vadd.f32 %v1128_v15, %v1034_v17  ;;  %v1145_v47 = vadd.f32 %v1129_v19, %v1035_v44  ;;  %v2120_v17 = vld [vmem:[%s5457_s9 + $0x1d8] sm:$0xff]  ;;  %v2091_v44 = vld [vmem:[%s5457_s9 + $0xf0] sm:$0xff]  ;;  %v1271_v15 = vmul.f32 %v4574_v20, %v5586_v8  ;;  %v3141_v19 = vpack.c.bf16 %v2074_v40, %v2073_v28  ;;  %v5598_v40 = vld [vmem:[#allocation32_spill] sm:$0xff] }
 0x1ac   : > { %3162 = vmatpush3.bf16.msra.mxu0 %v3161_v53  ;;  %v3167_v55 = vpack.c.bf16 %v2120_v17, %v2119_v26  ;;  %v3143_v59 = vpack.c.bf16 %v2092_v7, %v2091_v44  ;;  %v2075_v53 = vld [vmem:[%s5457_s9 + $0x70] sm:$0xff]  ;;  %v2076_v20 = vld [vmem:[%s5457_s9 + $0x78] sm:$0xff] }
 0x1ad   : > { %v4895_v12 = vpop.permute.xlu0 %1113  ;;  %v4897_v2 = vpop.permute.xlu1 %1117  ;;  %3134 = vmatpush3.bf16.msra.mxu1 %v3133_v24  ;;  %3164 = vmatprep.subr.bf16.mxu0 %v3163_v33  ;;  %v3169_v24 = vpack.c.bf16 %v2104_v11, %v2103_v48  ;;  %v2106_v33 = vld [vmem:[%s5457_s9 + $0x168] sm:$0xff]  ;;  %v3145_v62 = vpack.c.bf16 %v2076_v20, %v2075_v53  ;;  %v1300_v26 = vrot.slane %v1271_v15, 1  ;;  %v2107_v17 = vld [vmem:[%s5457_s9 + $0x170] sm:$0xff] }
 0x1ae   : > { %v1130_v41 = vsel %vm1127_vm7, %v4777_v14, %v4895_v12  ;;  %3136 = vmatprep.subr.bf16.mxu1 %v3135_v1  ;;  %v3294_v14 = vld [vmem:[%s5453_s5 + $0x10] sm:$0xff]  ;;  %v2105_v1 = vld [vmem:[%s5457_s9 + $0x160] sm:$0xff] }
 0x1af   : > { %v4924_v63 = vrot.slane %v3294_v14, %v5595_v34  ;;  %v1038_v14 = vmul.f32 %v4802_v39, %v5598_v40  ;;  %v5599_v48 = vld [vmem:[#allocation33_spill] sm:$0xff] }
 0x1b0   : > { %3166 = vmatpush3.bf16.msra.mxu0 %v3165_v27  ;;  %v3173_v27 = vpack.c.bf16 %v2106_v33, %v2105_v1  ;;  %v1039_v11 = vmul.f32 %v4812_v10, %v5599_v48 }
 0x1b1   : > { %v1212_v61 = vpop.permute.xlu0 %1211  ;;  %v4944_v21 = vpop.permute.xlu1 %1223  ;;  %3138 = vmatpush3.bf16.msra.mxu1 %v3137_v13  ;;  %v1036_v29 = vmul.f32 %v4924_v63, %v5586_v8  ;;  %3168 = vmatprep.subr.bf16.mxu0 %v3167_v55  ;;  %v2124_v8 = vld [vmem:[%s5457_s9 + $0x1f8] sm:$0xff]  ;;  %v1040_v39 = vmul.f32 %v4924_v63, %v5584_v35 }
 0x1b2   : > { %v1229_v56 = vsel %vm1180_vm2, %v4806_v43, %v1212_v61  ;;  %v1230_v31 = vsel %vm1180_vm2, %v1212_v61, %v4804_v16  ;;  %3140 = vmatprep.subr.bf16.mxu1 %v3139_v5  ;;  %v3171_v43 = vpack.c.bf16 %v2122_v57, %v2121_v50 }
 0x1b3   : > { %v1245_v9 = vadd.f32 %v1229_v56, %v1144_v38  ;;  %v1246_v45 = vadd.f32 %v1230_v31, %v1145_v47  ;;  %v1146_v38 = vadd.f32 %v1130_v41, %v1036_v29  ;;  %v3175_v41 = vpack.c.bf16 %v2124_v8, %v2123_v37 }
 0x1b4   : > { %3170 = vmatpush3.bf16.msra.mxu0 %v3169_v24 }
 0x1b5   : > { %v4972_v47 = vpop.permute.xlu0 %1215  ;;  %v1220_v4 = vpop.permute.xlu1 %1219  ;;  %v1322_v52 = vadd.f32 %v4604_v54, %v1245_v9  ;;  %v1323_v13 = vadd.f32 %v4607_v3, %v1246_v45  ;;  %3142 = vmatpush3.bf16.msra.mxu1 %v3141_v19  ;;  %3172 = vmatprep.subr.bf16.mxu0 %v3171_v43  ;;  %v2108_v54 = vld [vmem:[%s5457_s9 + $0x178] sm:$0xff]  ;;  %v5597_v3 = vrot.slane %v4582_v23, 1 }
 0x1b6   : > { %v1231_v18 = vsel %vm1180_vm2, %v4804_v16, %v4972_v47  ;;  %3144 = vmatprep.subr.bf16.mxu1 %v3143_v59  ;;  %v3177_v23 = vpack.c.bf16 %v2108_v54, %v2107_v17 }
 0x1b7   : > { %v1247_v5 = vadd.f32 %v1231_v18, %v1146_v38  ;;  %v1302_v28 = vsel %vm1293_vm15, %v1300_v26, %v5597_v3 }
 0x1b8   : > { %3174 = vmatpush3.bf16.msra.mxu0 %v3173_v27 }
 0x1b9   : > { %v1426_v16 = vpop.permute.xlu1 %1425  ;;  %v1120_v55 = vpop.permute.xlu0 %1119  ;;  %v1324_v44 = vadd.f32 %v1302_v28, %v1247_v5  ;;  %3146 = vmatpush3.bf16.msra.mxu1 %v3145_v62  ;;  %3176 = vmatprep.subr.bf16.mxu0 %v3175_v41 }
 0x1ba   : > { %v1132_v7 = vsel %vm1127_vm7, %v4897_v2, %v1120_v55  ;;  %v1133_v50 = vsel %vm1127_vm7, %v1120_v55, %v4852_v60 }
 0x1bb   : > { %v1148_v57 = vadd.f32 %v1132_v7, %v1038_v14  ;;  %v1149_v61 = vadd.f32 %v1133_v50, %v1039_v11  ;;  %v5600_v50 = vld [vmem:[#allocation19_spill] sm:$0xff] }
 0x1bc   : > { %3178 = vmatpush3.bf16.msra.mxu0 %v3177_v23 }
 0x1bd   : > { %v1561_v15 = vpop.permute.xlu1 %1560  ;;  %v4998_v19 = vpop.permute.xlu0 %1123 }
 0x1be   : > { %v1134_v10 = vsel %vm1127_vm7, %v4852_v60, %v4998_v19 }
 0x1bf   : > { %v1150_v2 = vadd.f32 %v1134_v10, %v1040_v39 }
 0x1c1   : > { %v1222_v56 = vpop.permute.xlu0 %1221 }
 0x1c2   : > { %v1233_v31 = vsel %vm1180_vm2, %v1220_v4, %v1222_v56  ;;  %v1234_v59 = vsel %vm1180_vm2, %v1222_v56, %v4944_v21 }
 0x1c3   : > { %v1249_v53 = vadd.f32 %v1233_v31, %v1148_v57  ;;  %v1250_v20 = vadd.f32 %v1234_v59, %v1149_v61  ;;  %v5601_v61 = vld [vmem:[#allocation30_spill] sm:$0xff] }
 0x1c4   : > { %v1773_v24 = vpop.permute.xlu1 %1772 }
 0x1c5   : > { %v5008_v35 = vpop.permute.xlu0 %1225  ;;  %v5011_v63 = vadd.f32 %v4640_v58, %v1249_v53  ;;  %v5014_v60 = vadd.f32 %v4643_v6, %v1250_v20 }
 0x1c6   : > { %v1235_v9 = vsel %vm1180_vm2, %v4944_v21, %v5008_v35 }
 0x1c7   : > { %v1251_v45 = vadd.f32 %v1235_v9, %v1150_v2  ;;  %v5602_v2 = vld [vmem:[#allocation22_spill] sm:$0xff] }
 0x1c8   : > { %v5006_v29 = vpop.permute.xlu1 %1907 }
 0x1c9   : > { %v1422_v1 = vpop.permute.xlu0 %1421  ;;  %v5022_v33 = vadd.f32 %v4655_v30, %v1251_v45 }
 0x1cc   : > { %v5019_v43 = vpop.permute.xlu1 %1435 }
 0x1cd   : > { %v1557_v37 = vpop.permute.xlu0 %1556 }
 0x1d0   : > { %v5024_v8 = vpop.permute.xlu1 %1431 }
 0x1d1   : > { %v5026_v38 = vpop.permute.xlu0 %1768 }
 0x1d4   : > { %v5028_v58 = vpop.permute.xlu1 %1570 }
 0x1d5   : > { %v5030_v6 = vpop.permute.xlu0 %1903 }
 0x1d8   : > { %v5032_v4 = vpop.permute.xlu1 %1566 }
 0x1d9   : > { %v1424_v62 = vpop.permute.xlu0 %1423 }
 0x1da   : > { %v1441_v18 = vsel %vm1127_vm7, %v1422_v1, %v1424_v62  ;;  %v1442_v26 = vsel %vm1127_vm7, %v1424_v62, %v1426_v16  ;;  %v5603_v62 = vld [vmem:[#allocation34_spill] sm:$0xff] }
 0x1db   : > { %v1457_v30 = vadd.f32 %v1441_v18, %v1322_v52  ;;  %v1458_v27 = vadd.f32 %v1442_v26, %v1323_v13 }
 0x1dc   : > { %v5034_v21 = vpop.permute.xlu1 %1782 }
 0x1dd   : > { %v1428_v5 = vpop.permute.xlu0 %1427 }
 0x1de   : > { %v1443_v17 = vsel %vm1127_vm7, %v1426_v16, %v1428_v5  ;;  %v1033_v16 = vrot.slane %v5600_v50, %v5595_v34 }
 0x1df   : > { %v1459_v54 = vadd.f32 %v1443_v17, %v1324_v44 }
 0x1e0   : > { %v5038_v41 = vpop.permute.xlu1 %1778  ;;  %v1037_v39 = vmul.f32 %v1033_v16, %v5601_v61  ;;  %v1041_v18 = vmul.f32 %v1033_v16, %v5603_v62 }
 0x1e1   : > { %v1559_v3 = vpop.permute.xlu0 %1558 }
 0x1e2   : > { %v1576_v40 = vsel %vm1180_vm2, %v1557_v37, %v1559_v3  ;;  %v1577_v14 = vsel %vm1180_vm2, %v1559_v3, %v1561_v15 }
 0x1e3   : > { %v1592_v55 = vadd.f32 %v1576_v40, %v1457_v30  ;;  %v1593_v48 = vadd.f32 %v1577_v14, %v1458_v27 }
 0x1e4   : > { %v5041_v28 = vpop.permute.xlu1 %1917 }
 0x1e5   : > { %v1563_v11 = vpop.permute.xlu0 %1562  ;;  %v1669_v52 = vadd.f32 %v4621_v25, %v1592_v55  ;;  %v1670_v13 = vadd.f32 %v4624_v42, %v1593_v48 }
 0x1e6   : > { %v1578_v44 = vsel %vm1180_vm2, %v1561_v15, %v1563_v11 }
 0x1e7   : > { %v1594_v23 = vadd.f32 %v1578_v44, %v1459_v54 }
 0x1e8   : > { %v5045_v7 = vpop.permute.xlu1 %1913 }
 0x1e9   : > { %v1771_v57 = vpop.permute.xlu0 %1770  ;;  %v1671_v56 = vadd.f32 %v5602_v2, %v1594_v23 }
 0x1ea   : > { %v1789_v31 = vsel %vm1127_vm7, %v1771_v57, %v1773_v24 }
 0x1eb   : > { %v1805_v25 = vadd.f32 %v1789_v31, %v1670_v13 }
 0x1ec   : > { %v1116_v10 = vpop.permute.xlu1 %1115 }
 0x1ed   : > { %v1131_v59 = vsel %vm1127_vm7, %v4895_v12, %v1116_v10  ;;  %v1775_v42 = vpop.permute.xlu0 %1774 }
 0x1ee   : > { %v1147_v53 = vadd.f32 %v1131_v59, %v1037_v39  ;;  %v1790_v9 = vsel %vm1127_vm7, %v1773_v24, %v1775_v42 }
 0x1ef   : > { %v1806_v45 = vadd.f32 %v1790_v9, %v1671_v56 }
 0x1f0   : > { %v1218_v20 = vpop.permute.xlu1 %1217 }
 0x1f1   : > { %v1232_v15 = vsel %vm1180_vm2, %v4972_v47, %v1218_v20  ;;  %v1906_v37 = vpop.permute.xlu0 %1905 }
 0x1f2   : > { %v1248_v1 = vadd.f32 %v1232_v15, %v1147_v53  ;;  %v1924_v12 = vsel %vm1180_vm2, %v1906_v37, %v5006_v29  ;;  %v5604_v15 = vld [vmem:[#allocation11_spill] sm:$0xff] }
 0x1f3   : > { %v1940_v17 = vadd.f32 %v1924_v12, %v1805_v25  ;;  %v5605_v12 = vld [vmem:[#allocation15_spill] sm:$0xff] }
 0x1f4   : > { %v1126_v26 = vpop.permute.xlu1 %1125  ;;  %v1325_v30 = vadd.f32 %v4647_v49, %v1248_v1 }
 0x1f5   : > { %v1135_v27 = vsel %vm1127_vm7, %v4998_v19, %v1126_v26  ;;  %v1910_v24 = vpop.permute.xlu0 %1909 }
 0x1f6   : > { %v1151_v54 = vadd.f32 %v1135_v27, %v1041_v18  ;;  %v1925_v47 = vsel %vm1180_vm2, %v5006_v29, %v1910_v24 }
 0x1f7   : > { %v5070_v14 = vadd.f32 %v1925_v47, %v1806_v45 }
 0x1f8   : > { %v1228_v3 = vpop.permute.xlu1 %1227 }
 0x1f9   : > { %v1236_v40 = vsel %vm1180_vm2, %v5008_v35, %v1228_v3  ;;  %v1434_v49 = vpop.permute.xlu0 %1433 }
 0x1fa   : > { %v1252_v55 = vadd.f32 %v1236_v40, %v1151_v54  ;;  %v1445_v23 = vsel %vm1127_vm7, %v5024_v8, %v1434_v49  ;;  %v1446_v29 = vsel %vm1127_vm7, %v1434_v49, %v5019_v43 }
 0x1fc   : > { %v1430_v48 = vpop.permute.xlu1 %1429  ;;  %v1329_v50 = vadd.f32 %v4676_v0, %v1252_v55  ;;  %v1462_v0 = vadd.f32 %v1446_v29, %v5014_v60  ;;  %v1923_v60 = vsel %vm1180_vm2, %v5030_v6, %v1906_v37  ;;  %v1977_v6 = vld [vmem:[%s5455_s7] sm:$0xf] }
 0x1fd   : > { %v1444_v13 = vsel %vm1127_vm7, %v1428_v5, %v1430_v48  ;;  %v1438_v16 = vpop.permute.xlu0 %1437  ;;  %v1461_v5 = vadd.f32 %v1445_v23, %v5011_v63  ;;  %v1947_v63 = vld [vmem:[%s5454_s6] sm:$0xf]  ;;  %v1986_v18 = vrot.slane %v1977_v6, %v5604_v15  ;;  %v2016_v48 = vstv %s2007_s20  ;;  %s3298_s20 = scalar_lea.vmem %s5405_s1, 256 }
 0x1fe   : > { %v1460_v19 = vadd.f32 %v1444_v13, %v1325_v30  ;;  %v1447_v35 = vsel %vm1127_vm7, %v5019_v43, %v1438_v16  ;;  %v1788_v43 = vsel %vm1127_vm7, %v5026_v38, %v1771_v57  ;;  %v1952_v57 = vrot.slane %v1947_v63, %v5595_v34  ;;  %p3299_p11 = scmp.ne.s32.totalorder %s5405_s1, %s3298_s20 }
 0x1ff   : > { %v1463_v39 = vadd.f32 %v1447_v35, %v5022_v33  ;;  %v1804_v20 = vadd.f32 %v1788_v43, %v1669_v52  ;;  %v1956_v45 = vrot.slane %v1947_v63, %v5604_v15  ;;  %v1960_v27 = vrot.slane %v1947_v63, %v5605_v12 }
 0x200   : > { %v1565_v44 = vpop.permute.xlu1 %1564  ;;  %v1990_v13 = vrot.slane %v1977_v6, %v5605_v12  ;;  %p3300_p12 = pnand %p3299_p11, %p3500_p5 }
 0x201   : > { %v1579_v61 = vsel %vm1180_vm2, %v1563_v11, %v1565_v44  ;;  %v1569_v2 = vpop.permute.xlu0 %1568  ;;  %v1939_v1 = vadd.f32 %v1923_v60, %v1804_v20  ;;  %v1970_v30 = vmul.f32 %v1956_v45, %v1940_v17  ;;  %v5606_v44 = vld [vmem:[#allocation21_spill] sm:$0xff]  ;;  %v1971_v23 = vmul.f32 %v1960_v27, %v5070_v14 }
 0x202   : > { %v1595_v10 = vadd.f32 %v1579_v61, %v1460_v19  ;;  %v1580_v8 = vsel %vm1180_vm2, %v5032_v4, %v1569_v2  ;;  %v1581_v59 = vsel %vm1180_vm2, %v1569_v2, %v5028_v58  ;;  %p3301_p13 = pneg %p3300_p12 }
 0x203   : > { %v1596_v11 = vadd.f32 %v1580_v8, %v1461_v5  ;;  %v1597_v33 = vadd.f32 %v1581_v59, %v1462_v0  ;;  %v1969_v26 = vmul.f32 %v1952_v57, %v1939_v1  ;;  %v1994_v8 = vrot.slane %v1977_v6, %v5606_v44 }
 0x204   : > { %v1672_v56 = vadd.f32 %v4658_v46, %v1595_v10  ;;  %v1777_v31 = vpop.permute.xlu1 %1776 }
 0x205   : > { %v1573_v46 = vpop.permute.xlu0 %1572  ;;  %v1673_v53 = vadd.f32 %v4666_v32, %v1596_v11  ;;  %v1674_v4 = vadd.f32 %v4673_v22, %v1597_v33  ;;  %v1791_v52 = vsel %vm1127_vm7, %v1775_v42, %v1777_v31 }
 0x206   : > { %v1582_v9 = vsel %vm1180_vm2, %v5028_v58, %v1573_v46  ;;  %v1982_v58 = vrot.slane %v1977_v6, %v5595_v34  ;;  %v1807_v55 = vadd.f32 %v1791_v52, %v1672_v56 }
 0x207   : > { %v1598_v38 = vadd.f32 %v1582_v9, %v1463_v39 }
 0x208   : > { %v1912_v25 = vpop.permute.xlu1 %1911  ;;  %v1999_v19 = vadd.f32 %v1982_v58, %v1969_v26 }
 0x209   : > { %v1781_v37 = vpop.permute.xlu0 %1780  ;;  %v1675_v32 = vadd.f32 %v4679_v36, %v1598_v38  ;;  %v1926_v54 = vsel %vm1180_vm2, %v1910_v24, %v1912_v25  ;;  %v1964_v24 = vrot.slane %v1947_v63, %v5606_v44 }
 0x20a   : > { %v1792_v36 = vsel %vm1127_vm7, %v5038_v41, %v1781_v37  ;;  %v1793_v42 = vsel %vm1127_vm7, %v1781_v37, %v5034_v21  ;;  %vm2008_vm8 = vcmp.ge.f32.partialorder %v1999_v19, 0.0  ;;  %v2017_v14 = vmul.f32 %v2016_v48, %v1999_v19 }
 0x20b   : > { %v1808_v29 = vadd.f32 %v1792_v36, %v1673_v53  ;;  %v1809_v35 = vadd.f32 %v1793_v42, %v1674_v4 }
 0x20c   : > { %v1440_v62 = vpop.permute.xlu1 %1439  ;;  %v5133_v1 = vsel %vm2008_vm8, %v1999_v19, %v2017_v14 }
 0x20d   : > { %v1448_v22 = vsel %vm1127_vm7, %v1438_v16, %v1440_v62  ;;  %v1785_v47 = vpop.permute.xlu0 %1784  ;;  %v2000_v16 = vadd.f32 %v1986_v18, %v1970_v30 }
 0x20e   : > { %v1464_v3 = vadd.f32 %v1448_v22, %v1329_v50  ;;  %v1942_v50 = vadd.f32 %v1926_v54, %v1807_v55  ;;  %v1794_v10 = vsel %vm1127_vm7, %v5034_v21, %v1785_v47 }
 0x20f   : > { %v2018_v60 = vmul.f32 %v2016_v48, %v2000_v16  ;;  %vm2009_vm9 = vcmp.ge.f32.partialorder %v2000_v16, 0.0 }
 0x210   : > { %v1575_v40 = vpop.permute.xlu1 %1574  ;;  %v1972_v59 = vmul.f32 %v1964_v24, %v1942_v50 }
 0x211   : > { %v1583_v49 = vsel %vm1180_vm2, %v1573_v46, %v1575_v40  ;;  %v1916_v61 = vpop.permute.xlu0 %1915 }
 0x212   : > { %v1599_v17 = vadd.f32 %v1583_v49, %v1464_v3  ;;  %v1927_v5 = vsel %vm1180_vm2, %v5045_v7, %v1916_v61  ;;  %v1928_v0 = vsel %vm1180_vm2, %v1916_v61, %v5041_v28  ;;  %v2001_v7 = vadd.f32 %v1990_v13, %v1971_v23 }
 0x213   : > { %v1943_v56 = vadd.f32 %v1927_v5, %v1808_v29  ;;  %v1944_v31 = vadd.f32 %v1928_v0, %v1809_v35  ;;  %v2002_v38 = vadd.f32 %v1994_v8, %v1972_v59 }
 0x214   : > { %v1676_v41 = vadd.f32 %v4682_v51, %v1599_v17  ;;  %v1787_v39 = vpop.permute.xlu1 %1786  ;;  %v1810_v51 = vadd.f32 %v1794_v10, %v1675_v32  ;;  %v2019_v62 = vmul.f32 %v2016_v48, %v2001_v7 }
 0x215   : > { %v1795_v2 = vsel %vm1127_vm7, %v1785_v47, %v1787_v39  ;;  %v1973_v43 = vmul.f32 %v1952_v57, %v1943_v56  ;;  %v1974_v11 = vmul.f32 %v1956_v45, %v1944_v31  ;;  %v1920_v21 = vpop.permute.xlu0 %1919  ;;  %vm2011_vm12 = vcmp.ge.f32.partialorder %v2002_v38, 0.0 }
 0x216   : > { %v1811_v33 = vadd.f32 %v1795_v2, %v1676_v41  ;;  %v1929_v46 = vsel %vm1180_vm2, %v5041_v28, %v1920_v21  ;;  %v5137_v28 = vsel %vm2009_vm9, %v2000_v16, %v2018_v60  ;;  %v2020_v30 = vmul.f32 %v2016_v48, %v2002_v38  ;;  %v2528_v60 = vld [vmem:[%s5461_s13 + $0x188] sm:$0xff] }
 0x217   : > { %v2003_v53 = vadd.f32 %v1982_v58, %v1973_v43  ;;  %v2004_v4 = vadd.f32 %v1986_v18, %v1974_v11  ;;  %v1945_v20 = vadd.f32 %v1929_v46, %v1810_v51  ;;  %v5607_v51 = vmov 0.0   ;;  %v2268_v11 = vld [vmem:[%s5459_s11 + $0x8] sm:$0xff]  ;;  %v2511_v46 = vld [vmem:[%s5461_s13 + $0x100] sm:$0xff] }
 0x218   : > { %v1922_v63 = vpop.permute.xlu1 %1921  ;;  %2297 = vmatprep.subr.mxu1 %v2268_v11 }
 0x219   : > { %v1930_v25 = vsel %vm1180_vm2, %v1920_v21, %v1922_v63  ;;  %vm2012_vm10 = vcmp.ge.f32.partialorder %v2003_v53, 0.0  ;;  %vm2013_vm11 = vcmp.ge.f32.partialorder %v2004_v4, 0.0  ;;  %v2021_v57 = vmul.f32 %v2016_v48, %v2003_v53  ;;  %v2270_v21 = vld [vmem:[%s5459_s11 + $0x18] sm:$0xff]  ;;  %v2527_v63 = vld [vmem:[%s5461_s13 + $0x180] sm:$0xff] }
 0x21a   : > { %v1946_v9 = vadd.f32 %v1930_v25, %v1811_v33  ;;  %v2022_v45 = vmul.f32 %v2016_v48, %v2004_v4  ;;  %v1975_v6 = vmul.f32 %v1960_v27, %v1945_v20  ;;  %vm2010_vm2 = vcmp.ge.f32.partialorder %v2001_v7, 0.0  ;;  %v2267_v33 = vld [vmem:[%s5459_s11] sm:$0xff]  ;;  %v2512_v25 = vld [vmem:[%s5461_s13 + $0x108] sm:$0xff]  ;;  %v2530_v20 = vld [vmem:[%s5461_s13 + $0x198] sm:$0xff] }
 0x21b   : > { %v5135_v32 = vsel %vm2012_vm10, %v2003_v53, %v2021_v57  ;;  %v5145_v40 = vsel %vm2010_vm2, %v2001_v7, %v2019_v62  ;;  %v3211_v7 = vpack.c.bf16 %v2528_v60, %v2527_v63  ;;  %v3213_v53 = vpack.c.bf16 %v2512_v25, %v2511_v46  ;;  %v2514_v57 = vld [vmem:[%s5461_s13 + $0x118] sm:$0xff]  ;;  %v2503_v60 = vld [vmem:[%s5461_s13 + $0xc0] sm:$0xff]  ;;  %v2533_v46 = vld [vmem:[%s5461_s13 + $0x1b0] sm:$0xff] }
 0x21c   : > { %v1976_v37 = vmul.f32 %v1964_v24, %v1946_v9  ;;  %v5139_v22 = vsel %vm2013_vm11, %v2004_v4, %v2022_v45  ;;  %v2033_v52 = vadd.f32 %v5135_v32, %v5133_v1  ;;  %v2005_v58 = vadd.f32 %v1990_v13, %v1975_v6  ;;  %v2529_v4 = vld [vmem:[%s5461_s13 + $0x190] sm:$0xff]  ;;  %v2531_v6 = vld [vmem:[%s5461_s13 + $0x1a0] sm:$0xff] }
 0x21d   : > { %v2040_v26 = vadd.f32 %v5139_v22, %v5137_v28  ;;  %v5151_v13 = vsel %vm2011_vm12, %v2002_v38, %v2020_v30  ;;  %3212 = vmatprep.subr.bf16.mxu0 %v3211_v7  ;;  %v3215_v9 = vpack.c.bf16 %v2530_v20, %v2529_v4  ;;  %v2513_v38 = vld [vmem:[%s5461_s13 + $0x110] sm:$0xff]  ;;  %v2504_v7 = vld [vmem:[%s5461_s13 + $0xc8] sm:$0xff]  ;;  %v2487_v4 = vld [vmem:[%s5461_s13 + $0x40] sm:$0xff] }
 0x21e   : > { %v2006_v18 = vadd.f32 %v1994_v8, %v1976_v37  ;;  %v2034_v27 = vrot.slane %v2033_v52, 4  ;;  %vm2014_vm13 = vcmp.ge.f32.partialorder %v2005_v58, 0.0  ;;  %v2023_v54 = vmul.f32 %v2016_v48, %v2005_v58  ;;  %v2532_v37 = vld [vmem:[%s5461_s13 + $0x1a8] sm:$0xff] }
 0x21f   : > { %v2041_v47 = vrot.slane %v2040_v26, 4  ;;  %v3217_v45 = vpack.c.bf16 %v2514_v57, %v2513_v38  ;;  %v3219_v62 = vpack.c.bf16 %v2532_v37, %v2531_v6  ;;  %v3195_v25 = vpack.c.bf16 %v2504_v7, %v2503_v60  ;;  %v2488_v20 = vld [vmem:[%s5461_s13 + $0x48] sm:$0xff]  ;;  %v2517_v57 = vld [vmem:[%s5461_s13 + $0x130] sm:$0xff]  ;;  %v2526_v60 = vld [vmem:[%s5461_s13 + $0x178] sm:$0xff] }
 0x220   : > { %vm2015_vm14 = vcmp.ge.f32.partialorder %v2006_v18, 0.0  ;;  %v2024_v3 = vmul.f32 %v2016_v48, %v2006_v18  ;;  %v2035_v55 = vadd.f32 %v2034_v27, %v2033_v52  ;;  %v5147_v36 = vsel %vm2014_vm13, %v2005_v58, %v2023_v54  ;;  %v2515_v52 = vld [vmem:[%s5461_s13 + $0x120] sm:$0xff]  ;;  %v2516_v58 = vld [vmem:[%s5461_s13 + $0x128] sm:$0xff]  ;;  %v2505_v37 = vld [vmem:[%s5461_s13 + $0xd0] sm:$0xff] }
 0x221   : > { %v2047_v42 = vadd.f32 %v5147_v36, %v5145_v40  ;;  %v2042_v49 = vadd.f32 %v2041_v47, %v2040_v26  ;;  %v2125_v54 = vld [vmem:[%s5458_s10] sm:$0x1]  ;;  %v3197_v38 = vpack.c.bf16 %v2488_v20, %v2487_v4 }
 0x222   : > { %v5153_v17 = vsel %vm2015_vm14, %v2006_v18, %v2024_v3  ;;  %v2036_v19 = vrot.slane %v2035_v55, 2  ;;  %v3221_v18 = vpack.c.bf16 %v2516_v58, %v2515_v52  ;;  %v2535_v52 = vld [vmem:[%s5461_s13 + $0x1c0] sm:$0xff] }
 0x223   : > { %v2054_v16 = vadd.f32 %v5153_v17, %v5151_v13  ;;  %v2048_v24 = vrot.slane %v2047_v42, 4  ;;  %v2043_v48 = vrot.slane %v2042_v49, 2 }
 0x224   : > { %v2037_v50 = vadd.f32 %v2036_v19, %v2035_v55  ;;  %v2496_v19 = vld [vmem:[%s5461_s13 + $0x88] sm:$0xff] }
 0x225   : > { %v2055_v23 = vrot.slane %v2054_v16, 4  ;;  %v2049_v29 = vadd.f32 %v2048_v24, %v2047_v42  ;;  %v2044_v35 = vadd.f32 %v2043_v48, %v2042_v49  ;;  %v2495_v49 = vld [vmem:[%s5461_s13 + $0x80] sm:$0xff]  ;;  %v2269_v48 = vld [vmem:[%s5459_s11 + $0x10] sm:$0xff] }
 0x226   : > { %v2038_v61 = vrot.slane %v2037_v50, 1 }
 0x227   : > { %v2056_v41 = vadd.f32 %v2055_v23, %v2054_v16  ;;  %v2045_v39 = vrot.slane %v2044_v35, 1  ;;  %v2050_v10 = vrot.slane %v2049_v29, 2  ;;  %v2479_v23 = vld [vmem:[%s5461_s13] sm:$0xff] }
 0x228   : > { %v2039_v5 = vadd.f32 %v2038_v61, %v2037_v50  ;;  %v3179_v50 = vpack.c.bf16 %v2496_v19, %v2495_v49  ;;  %v2498_v61 = vld [vmem:[%s5461_s13 + $0x98] sm:$0xff]  ;;  %v2508_v49 = vld [vmem:[%s5461_s13 + $0xe8] sm:$0xff]  ;;  %v2537_v19 = vld [vmem:[%s5461_s13 + $0x1d0] sm:$0xff] }
 0x229   : > { %v2057_v0 = vrot.slane %v2056_v41, 2  ;;  %v2046_v2 = vadd.f32 %v2045_v39, %v2044_v35  ;;  %v2051_v56 = vadd.f32 %v2050_v10, %v2049_v29  ;;  %v2480_v29 = vld [vmem:[%s5461_s13 + $0x8] sm:$0xff]  ;;  %v2497_v35 = vld [vmem:[%s5461_s13 + $0x90] sm:$0xff] }
 0x22a   : > { %v3183_v39 = vpack.c.bf16 %v2498_v61, %v2497_v35  ;;  %v2481_v10 = vld [vmem:[%s5461_s13 + $0x10] sm:$0xff]  ;;  %v2522_v61 = vld [vmem:[%s5461_s13 + $0x158] sm:$0xff] }
 0x22b   : > { %v2058_v31 = vadd.f32 %v2057_v0, %v2056_v41  ;;  %2190 = vmatprep.mubr.f32.mxu1 %v2046_v2  ;;  %v2052_v14 = vrot.slane %v2051_v56, 1  ;;  %v3181_v41 = vpack.c.bf16 %v2480_v29, %v2479_v23  ;;  %v2499_v0 = vld [vmem:[%s5461_s13 + $0xa0] sm:$0xff]  ;;  %v2500_v2 = vld [vmem:[%s5461_s13 + $0xa8] sm:$0xff]  ;;  %v2521_v29 = vld [vmem:[%s5461_s13 + $0x150] sm:$0xff] }
 0x22c   : > { %2191 = vmatmul.mubr.f32.vlgmr.msra.gmra.mrb[6].mxu1 %v2039_v5  ;;  %v2482_v5 = vld [vmem:[%s5461_s13 + $0x18] sm:$0xff]  ;;  %v2492_v23 = vld [vmem:[%s5461_s13 + $0x68] sm:$0xff] }
 0x22d   : > { %v2059_v8 = vrot.slane %v2058_v31, 1  ;;  %v2053_v59 = vadd.f32 %v2052_v14, %v2051_v56  ;;  %2361 = vmatprep.mubr.f32.mxu1 %v5607_v51  ;;  %2298 = vmatpush1.msra.mxu1 %v2267_v33  ;;  %v3185_v56 = vpack.c.bf16 %v2482_v5, %v2481_v10  ;;  %v2483_v14 = vld [vmem:[%s5461_s13 + $0x20] sm:$0xff]  ;;  %v2485_v33 = vld [vmem:[%s5461_s13 + $0x30] sm:$0xff]  ;;  %v3233_v10 = vpack.c.bf16 %v2522_v61, %v2521_v29 }
 0x22e   : > { %2368 = vmatprep.subr.mxu1 %v2270_v21  ;;  %v2486_v21 = vld [vmem:[%s5461_s13 + $0x38] sm:$0xff] }
 0x22f   : > { %v2060_v43 = vadd.f32 %v2059_v8, %v2058_v31  ;;  %v3187_v31 = vpack.c.bf16 %v2500_v2, %v2499_v0  ;;  %v2484_v8 = vld [vmem:[%s5461_s13 + $0x28] sm:$0xff]  ;;  %v3193_v63 = vpack.c.bf16 %v2486_v21, %v2485_v33  ;;  %v2539_v0 = vld [vmem:[%s5461_s13 + $0x1e0] sm:$0xff] }
 0x230   : > { %v2540_v2 = vld [vmem:[%s5461_s13 + $0x1e8] sm:$0xff] }
 0x231   : > { %2260 = vmatprep.mubr.f32.mxu0 %v2060_v43  ;;  %v3189_v43 = vpack.c.bf16 %v2484_v8, %v2483_v14  ;;  %v2494_v14 = vld [vmem:[%s5461_s13 + $0x78] sm:$0xff]  ;;  %v2523_v8 = vld [vmem:[%s5461_s13 + $0x160] sm:$0xff] }
 0x232   : > { %2261 = vmatmul.mubr.f32.vlgmr.msra.gmra.mrb[12].mxu0 %v2053_v59  ;;  %v2501_v59 = vld [vmem:[%s5461_s13 + $0xb0] sm:$0xff] }
 0x233   : > { %3214 = vmatpush3.bf16.msra.mxu0 %v3213_v53  ;;  %v2534_v53 = vld [vmem:[%s5461_s13 + $0x1b8] sm:$0xff] }
 0x234   : > { %3216 = vmatprep.subr.bf16.mxu0 %v3215_v9  ;;  %v3223_v9 = vpack.c.bf16 %v2534_v53, %v2533_v46  ;;  %v2271_v46 = vld [vmem:[%s5460_s12] sm:$0xf] }
 0x235   : > { %v2280_v53 = vrot.slane %v2271_v46, %v5604_v15 }
 0x237   : > { %3218 = vmatpush3.bf16.msra.mxu0 %v3217_v45  ;;  %v2518_v45 = vld [vmem:[%s5461_s13 + $0x138] sm:$0xff] }
 0x238   : > { %3220 = vmatprep.subr.bf16.mxu0 %v3219_v62  ;;  %v3225_v6 = vpack.c.bf16 %v2518_v45, %v2517_v57  ;;  %v2506_v62 = vld [vmem:[%s5461_s13 + $0xd8] sm:$0xff]  ;;  %v2288_v45 = vrot.slane %v2271_v46, %v5606_v44 }
 0x239   : > { %v3199_v58 = vpack.c.bf16 %v2506_v62, %v2505_v37 }
 0x23b   : > { %3222 = vmatpush3.bf16.msra.mxu0 %v3221_v18  ;;  %v2536_v18 = vld [vmem:[%s5461_s13 + $0x1c8] sm:$0xff] }
 0x23c   : > { %3224 = vmatprep.subr.bf16.mxu0 %v3223_v9 }
 0x23f   : > { %3226 = vmatpush3.bf16.msra.mxu0 %v3225_v6 }
 0x2ff   : > { %v2872_v26 = vpop.f32.mrb[6].mxu1 }
 0x300   : > { %v2873_v30 = vpop.f32.mrb[7].mxu1 }
 0x301   : > { %v2874_v27 = vadd.f32 %v2873_v30, %v2872_v26  ;;  %v2489_v26 = vld [vmem:[%s5461_s13 + $0x50] sm:$0xff]  ;;  %v2490_v30 = vld [vmem:[%s5461_s13 + $0x58] sm:$0xff] }
 0x303   : > { %v2193_v55 = vadd.f32 %v2874_v27, %v2125_v54  ;;  %v3227_v27 = vpack.c.bf16 %v2536_v18, %v2535_v52  ;;  %v3201_v54 = vpack.c.bf16 %v2490_v30, %v2489_v26 }
 0x305   : > { %v2907_v3 = vpop.f32.mrb[12].mxu0  ;;  %3228 = vmatprep.subr.bf16.mxu0 %v3227_v27 }
 0x306   : > { %v2908_v47 = vpop.f32.mrb[13].mxu0 }
 0x307   : > { %v2909_v42 = vadd.f32 %v2908_v47, %v2907_v3  ;;  %v2519_v3 = vld [vmem:[%s5461_s13 + $0x140] sm:$0xff]  ;;  %v2520_v47 = vld [vmem:[%s5461_s13 + $0x148] sm:$0xff] }
 0x309   : > { %v2263_v16 = vadd.f32 %v2909_v42, %v2193_v55  ;;  %v2507_v55 = vld [vmem:[%s5461_s13 + $0xe0] sm:$0xff]  ;;  %v3229_v42 = vpack.c.bf16 %v2520_v47, %v2519_v3 }
 0x30b   : > { %v2266_v24 = vmax.f32 %v2263_v16, 0.0  ;;  %v2538_v16 = vld [vmem:[%s5461_s13 + $0x1d8] sm:$0xff]  ;;  %3230 = vmatpush3.bf16.msra.mxu0 %v3229_v42 }
 0x30d   : > { %2811 = vmatmul.mubr.msk.f32.vlgmr.msra.gmra.mrb[8].mxu1 %vm2293_vm0, %v2266_v24 }
 0x30e   : > { %2369 = vmatpush1.msra.mxu1 %v2269_v48  ;;  %2432 = vmatprep.mubr.f32.mxu1 %v5607_v51  ;;  %v2502_v51 = vld [vmem:[%s5461_s13 + $0xb8] sm:$0xff]  ;;  %v3231_v48 = vpack.c.bf16 %v2538_v16, %v2537_v19 }
 0x30f   : > { %3180 = vmatprep.subr.bf16.mxu1 %v3179_v50  ;;  %v3191_v11 = vpack.c.bf16 %v2502_v51, %v2501_v59  ;;  %v2491_v50 = vld [vmem:[%s5461_s13 + $0x60] sm:$0xff]  ;;  %v2524_v59 = vld [vmem:[%s5461_s13 + $0x168] sm:$0xff] }
 0x310   : > { %v3205_v35 = vpack.c.bf16 %v2492_v23, %v2491_v50  ;;  %3232 = vmatprep.subr.bf16.mxu0 %v3231_v48  ;;  %v3237_v33 = vpack.c.bf16 %v2524_v59, %v2523_v8 }
 0x311   : > { %2812 = vmatmul.mubr.msk.f32.vlgmr.msra.gmra.mrb[10].mxu1 %vm2293_vm0, %v2266_v24  ;;  %v3203_v24 = vpack.c.bf16 %v2508_v49, %v2507_v55  ;;  %3234 = vmatpush3.bf16.msra.mxu0 %v3233_v10  ;;  %v3295_v10 = vld [vmem:[%s3741_s24] sm:$0xff] }
 0x312   : > { %3182 = vmatpush3.bf16.msra.mxu1 %v3181_v41  ;;  %v2509_v41 = vld [vmem:[%s5461_s13 + $0xf0] sm:$0xff] }
 0x313   : > { %3184 = vmatprep.subr.bf16.mxu1 %v3183_v39  ;;  %v2510_v39 = vld [vmem:[%s5461_s13 + $0xf8] sm:$0xff] }
 0x314   : > { %v3207_v5 = vpack.c.bf16 %v2510_v39, %v2509_v41 }
 0x316   : > { %3186 = vmatpush3.bf16.msra.mxu1 %v3185_v56  ;;  %v2493_v56 = vld [vmem:[%s5461_s13 + $0x70] sm:$0xff] }
 0x317   : > { %3188 = vmatprep.subr.bf16.mxu1 %v3187_v31  ;;  %v3235_v31 = vpack.c.bf16 %v2540_v2, %v2539_v0  ;;  %v3209_v51 = vpack.c.bf16 %v2494_v14, %v2493_v56  ;;  %v3297_v2 = vld [vmem:[%s3741_s24 + $0x10] sm:$0xff] }
 0x319   : > { %3236 = vmatprep.subr.bf16.mxu0 %v3235_v31 }
 0x31a   : > { %3190 = vmatpush3.bf16.msra.mxu1 %v3189_v43  ;;  %v2541_v43 = vld [vmem:[%s5461_s13 + $0x1f0] sm:$0xff]  ;;  %3238 = vmatpush3.bf16.msra.mxu0 %v3237_v33 }
 0x31b   : > { %3192 = vmatprep.subr.bf16.mxu1 %v3191_v11  ;;  %v2542_v11 = vld [vmem:[%s5461_s13 + $0x1f8] sm:$0xff] }
 0x31c   : > { %v3239_v21 = vpack.c.bf16 %v2542_v11, %v2541_v43  ;;  %v2813_v11 = vld [vmem:[%s5462_s14] ss:$0 sm:$0xff] }
 0x31e   : > { %3194 = vmatpush3.bf16.msra.mxu1 %v3193_v63  ;;  %v2525_v63 = vld [vmem:[%s5461_s13 + $0x170] sm:$0xff]  ;;  %3240 = vmatprep.subr.bf16.mxu0 %v3239_v21 }
 0x31f   : > { %3196 = vmatprep.subr.bf16.mxu1 %v3195_v25  ;;  %v3241_v7 = vpack.c.bf16 %v2526_v60, %v2525_v63  ;;  %v2276_v25 = vrot.slane %v2271_v46, %v5595_v34  ;;  %v2814_v63 = vld [vmem:[%s5463_s15] ss:$0 sm:$0xff] }
 0x321   : > { %3242 = vmatpush3.bf16.msra.mxu0 %v3241_v7 }
 0x322   : > { %3198 = vmatpush3.bf16.msra.mxu1 %v3197_v38  ;;  %v2284_v38 = vrot.slane %v2271_v46, %v5605_v12 }
 0x323   : > { %3200 = vmatprep.subr.bf16.mxu1 %v3199_v58 }
 0x326   : > { %3202 = vmatpush3.bf16.msra.mxu1 %v3201_v54 }
 0x327   : > { %3204 = vmatprep.subr.bf16.mxu1 %v3203_v24 }
 0x32a   : > { %3206 = vmatpush3.bf16.msra.mxu1 %v3205_v35 }
 0x32b   : > { %3208 = vmatprep.subr.bf16.mxu1 %v3207_v5  ;;  %v3296_v5 = vld [vmem:[%s3741_s24 + $0x8] sm:$0xff]  ;;  %s3304_s24 = scalar_lea.vmem %s3303_s21, 512 }
 0x32c   : > { %v2715_v0 = vrot.slane %v3296_v5, 1  ;;  %p3306_p1 = scmp.lt.s32.totalorder %s3304_s24, %s3298_s20 }
 0x32e   : > { %3210 = vmatpush3.bf16.msra.mxu1 %v3209_v51  ;;  %p3307_p2 = por %p3306_p1, %p3305_p0 }
 0x330   : > { %p3308_p3 = pnand %p3307_p2, %p3301_p13 }
 0x3e0   : > { %v2363_v4 = vpop.f32.mrb[8].mxu1 }
 0x3e1   : > { %v2364_v20 = vadd.f32 %v2363_v4, %v2276_v25  ;;  %v2365_v9 = vpop.f32.mrb[9].mxu1 }
 0x3e2   : > { %v2366_v57 = vadd.f32 %v2365_v9, %v2280_v53 }
 0x3e3   : > { %v2439_v6 = vmul.f32 0.16666667, %v2364_v20 }
 0x3e4   : > { %v2440_v37 = vmul.f32 0.16666667, %v2366_v57  ;;  %v2434_v62 = vpop.f32.mrb[10].mxu1 }
 0x3e5   : > { %v2443_v52 = vadd.f32 0.5, %v2439_v6  ;;  %v2435_v58 = vadd.f32 %v2434_v62, %v2284_v38  ;;  %v2436_v18 = vpop.f32.mrb[11].mxu1 }
 0x3e6   : > { %v2444_v26 = vadd.f32 0.5, %v2440_v37  ;;  %v2437_v30 = vadd.f32 %v2436_v18, %v2288_v45 }
 0x3e7   : > { %v2447_v27 = vmax.f32 %v2443_v52, 0.0  ;;  %v2441_v54 = vmul.f32 0.16666667, %v2435_v58 }
 0x3e8   : > { %v2448_v3 = vmax.f32 %v2444_v26, 0.0  ;;  %v2442_v15 = vmul.f32 0.16666667, %v2437_v30 }
 0x3e9   : > { %v2451_v47 = vmin.f32 %v2447_v27, 1.0  ;;  %v2445_v55 = vadd.f32 0.5, %v2441_v54 }
 0x3ea   : > { %v2452_v42 = vmin.f32 %v2448_v3, 1.0  ;;  %v2446_v49 = vadd.f32 0.5, %v2442_v15 }
 0x3eb   : > { %v2458_v12 = vrot.slane %v2451_v47, %v5595_v34  ;;  %v2449_v19 = vmax.f32 %v2445_v55, 0.0 }
 0x3ec   : > { %v2462_v44 = vrot.slane %v2452_v42, %v5595_v34  ;;  %v2450_v16 = vmax.f32 %v2446_v49, 0.0 }
 0x3ed   : > { %v2453_v24 = vmin.f32 %v2449_v19, 1.0  ;;  %v2471_v23 = vmul.f32 %v2458_v12, %v5133_v1 }
 0x3ee   : > { %v2454_v48 = vmin.f32 %v2450_v16, 1.0  ;;  %v2472_v50 = vmul.f32 %v2462_v44, %v5137_v28  ;;  %v2476_v61 = vmul.f32 %v2462_v44, %v5139_v22  ;;  %v2475_v28 = vmul.f32 %v2458_v12, %v5135_v32 }
 0x3ef   : > { %v2466_v29 = vrot.slane %v2453_v24, %v5595_v34  ;;  %v2714_v22 = vrot.slane %v3295_v10, 1 }
 0x3f0   : > { %v2470_v35 = vrot.slane %v2454_v48, %v5595_v34  ;;  %2607 = vmatprep.mubr.f32.mxu1 %v2472_v50 }
 0x3f1   : > { %2608 = vmatmul.mubr.f32.vlgmr.msra.gmra.mrb[12].mxu1 %v2471_v23  ;;  %v2473_v39 = vmul.f32 %v2466_v29, %v5145_v40  ;;  %v2477_v34 = vmul.f32 %v2466_v29, %v5147_v36  ;;  %v2716_v40 = vsel %vm1293_vm15, %v2714_v22, %v2715_v0 }
 0x3f2   : > { %2612 = vmatprep.mubr.f32.mxu1 %v2476_v61  ;;  %v2474_v41 = vmul.f32 %v2470_v35, %v5151_v13  ;;  %v2478_v1 = vmul.f32 %v2470_v35, %v5153_v17  ;;  %v2717_v13 = vrot.slane %v3297_v2, 1 }
 0x3f4   : > { %2682 = vmatprep.mubr.f32.mxu0 %v2474_v41  ;;  %v2718_v32 = vsel %vm1293_vm15, %v2715_v0, %v2717_v13 }
 0x3f5   : > { %2613 = vmatmul.mubr.f32.gmra.mrb[14].mxu1 %v2475_v28  ;;  %2683 = vmatmul.mubr.f32.vlgmr.msra.gmra.mrb[14].mxu0 %v2473_v39 }
 0x3f6   : > { %2687 = vmatprep.mubr.f32.mxu0 %v2478_v1 }
 0x3f9   : > { %2688 = vmatmul.mubr.f32.gmra.mrb[16].mxu0 %v2477_v34 }
 0x4c4   : > { %v2942_v56 = vpop.f32.mrb[12].mxu1 }
 0x4c5   : > { %v2943_v31 = vpop.f32.mrb[13].mxu1 }
 0x4c6   : > { %v2944_v17 = vadd.f32 %v2943_v31, %v2942_v56 }
 0x4c8   : > { %v2945_v14 = vpop.f32.mrb[14].mxu1  ;;  %v2980_v8 = vpop.f32.mrb[14].mxu0 }
 0x4c9   : > { %v2946_v59 = vpop.f32.mrb[15].mxu1  ;;  %v2981_v51 = vpop.f32.mrb[15].mxu0 }
 0x4ca   : > { %v2947_v36 = vadd.f32 %v2946_v59, %v2945_v14  ;;  %v2982_v43 = vadd.f32 %v2981_v51, %v2980_v8 }
 0x4cc   : > { %v2685_v33 = vadd.f32 %v2982_v43, %v2944_v17  ;;  %v2983_v21 = vpop.f32.mrb[16].mxu0 }
 0x4cd   : > { %v2984_v60 = vpop.f32.mrb[17].mxu0 }
 0x4ce   : > { %v2700_v7 = vmul.f32 %v2813_v11, %v2685_v33  ;;  %v2985_v46 = vadd.f32 %v2984_v60, %v2983_v21 }
 0x4d0   : > { %v2709_v25 = vadd.f32 %v2814_v63, %v2700_v7  ;;  %v2690_v53 = vadd.f32 %v2985_v46, %v2947_v36 }
 0x4d2   : > { %v2721_v4 = vadd.f32 %v2716_v40, %v2709_v25  ;;  %v2701_v20 = vmul.f32 %v2813_v11, %v2690_v53 }
 0x4d4   : > { %2723 = vst [vmem:[%s516_s29] sm:$0xff] %v2721_v4  ;;  %v2710_v9 = vadd.f32 %v2814_v63, %v2701_v20 }
 0x4d6   : > { %v2722_v38 = vadd.f32 %v2718_v32, %v2710_v9 }
 0x4d8   : > { %2724 = vst [vmem:[%s516_s29 + $0x8] sm:$0xff] %v2722_v38 }
 0x4d9   : > { %3311 = shalt.err (!%p3308_p3)
}
 0x4da   : > { %s3312_s17 = scalar_lea.hbm %s5403_s0, 256  ;;  %s3316_s30 = scalar_lea.hbm %s5464_s16, 512 }
 0x4db   : > { %p3313_p4 = scmp.ne.s32.totalorder %s5403_s0, %s3312_s17  ;;  %p3317_p9 = scmp.lt.u32.totalorder %s5403_s0, %s5464_s16 }
 0x4dc   : > { %p3318_p10 = scmp.lt.u32.totalorder %s3316_s30, %s3312_s17  ;;  %p3320_p12 = scmp.lt.u32.totalorder %s3312_s17, %s5403_s0 }
 0x4dd   : > { %p3314_p7 = pnand %p3313_p4, %p3500_p5 }
 0x4de   : > { %p3319_p11 = por %p3318_p10, %p3317_p9 }
 0x4df   : > { %p3315_p8 = pneg %p3314_p7 }
 0x4e0   : > { %p3321_p13 = por %p3320_p12, %p3319_p11 }
 0x4e2   : > { %p3322_p0 = pnand %p3321_p13, %p3315_p8 }
 0x4e4   : > { %3325 = shalt.err (!%p3322_p0)
}
 0x4e5   : > { %s3369_s19 = smov 128   ;;  %s3370_s20 = smov 8  }
 0x4e6   : > { %3244 = dma.vmem_to_hbm [thread:$0]  (%p3500_p5), %s5405_s1, 256, %s5403_s0, %s5407_s22, %s3369_s19, %s3369_s19, %s3370_s20  }
 0x4e7 PF: > { %p3250_p1 = scmp.ge.s32.totalorder %s3360_s28, 2  ;;  %s2754_s21 = sand.u32 1, %s3348_s25  }
 0x4e8   : > { %s2755_s24 = scalar_lea.sflag [#allocation5], %s2754_s21 }
 0x4e9   : > { %p3247_p2 = pnand %p3250_p1, %p3504_p6 }
 0x4eb   : > { %3343 = dma.done.wait (!%p3247_p2), %s2755_s24, 256  }
 0x4ec   : > { %3345 = vsyncadd (!%p3247_p2), %s2755_s24, 4294967040  ;;  %s5609_s28 = sld [smem:[#allocation8_spill]]  ;;  %s5610_s17 = sld [smem:[#allocation7_spill]] }
 0x4ed   : > { %s5611_s27 = sld [smem:[#allocation9_spill]]  ;;  %s5612_s25 = smov %s3352_s26 }
 0x4f2   : > { %p28_p3 = scmp.ge.s32.totalorder %s5609_s28, 4   ;;  %s5613_s26 = smov %s5610_s17 }
 0x4f4   :  { %30 = sbr.rel (!%p28_p3) target bundleno = 8 (0x8), region = 119 }
 0x4fb   :  { %2760 = vsyncpa [#allocation5], 1 }
 0x4fc   :  { %2762 = vsyncpa [#allocation5 + $0x1], 1 }

</bundles_post_ra>
